<compile_context>
chip_gen: v7x
topology: tpu7x:2x2x1
jax: 0.10.0
libtpu: 0.0.40
codegen_flags: <defaults>
</compile_context>

<pallas_src>
import functools

import jax
import jax.numpy as jnp
from jax.experimental import pallas as pl
from jax.experimental.pallas import tpu as pltpu


# ---------------------------------------------------------------------------
# Kernel: single invocation, everything VMEM-resident.
# ---------------------------------------------------------------------------
def _weighted_sigma_fused_kernel(x_ref, w1_ref, b1_ref, w2_ref, b2_ref,
                                 w3_ref, b3_ref, scale_ref, y_ref):
    x = x_ref[...]                                           # (B, in) f32
    batch, in_sz = x.shape
    out_sz = y_ref.shape[1]

    # ---- layer 1 -----------------------------------------------------------
    if in_sz == 1:
        # A K=1 systolic push wastes the MXU depth: do it on the VPU as a
        # (B,1) x (1,n*h) broadcast multiply instead.
        h1_pre = x * w1_ref[...].astype(jnp.float32) + b1_ref[...]
    else:
        h1_pre = jnp.dot(x.astype(w1_ref.dtype), w1_ref[...],
                         preferred_element_type=jnp.float32) + b1_ref[...]
    h1 = jnp.tanh(h1_pre)                                    # (B, n*h) f32

    # ---- layer 2 (dominant, lane-dense MXU matmul) --------------------------
    h2 = jnp.tanh(jnp.dot(h1.astype(w2_ref.dtype), w2_ref[...],
                          preferred_element_type=jnp.float32) + b2_ref[...])

    # ---- layer 3 ------------------------------------------------------------
    logits = jnp.dot(h2.astype(w3_ref.dtype), w3_ref[...],
                     preferred_element_type=jnp.float32) + b3_ref[...]   # (B, n*out)

    # Stable sigmoid on the EUP: sigmoid(x) = 0.5*(1 + tanh(x/2)).
    probs = 0.5 * (jnp.tanh(0.5 * logits) + 1.0)

    # ---- weighted average: VPU multiply + lane reduce (no N=1 matmul) -------
    weighted = probs * scale_ref[...]                        # (B, n*out)
    if out_sz == 1:
        y = jnp.sum(weighted, axis=-1, keepdims=True)
    else:
        n_models = weighted.shape[1] // out_sz
        y = jnp.sum(weighted.reshape(batch, n_models, out_sz), axis=1)
    y_ref[...] = y.astype(y_ref.dtype)


# ---------------------------------------------------------------------------
# Wrapper-side weight packing.  Call ONCE (outside the per-call hot path) and
# reuse the returned tuple -- the block-diagonal build / transposes here must
# not be re-executed every forward call.
# ---------------------------------------------------------------------------
def _block_diag(blocks):
    """(n, r, c) stacked blocks -> (n*r, n*c) block-diagonal matrix."""
    n, r, c = blocks.shape
    eye = jnp.eye(n, dtype=blocks.dtype)
    bd = blocks[:, None, :, :] * eye[:, :, None, None]       # (n, n, r, c)
    return bd.transpose(0, 2, 1, 3).reshape(n * r, n * c)


def pack_fused_params(params, weights, weight_dtype=jnp.bfloat16):
    """Fuse n_train per-model MLPs into one lane-dense MLP + scale row."""
    w1, b1, w2, b2, w3, b3 = params
    n, in_sz, h = w1.shape
    out_sz = w3.shape[-1]

    inv_w = 1.0 / weights.astype(jnp.float32)
    scale = inv_w / jnp.sum(inv_w)                           # (1/w)/sum(1/w), (n,)

    w1_cat = w1.transpose(1, 0, 2).reshape(in_sz, n * h).astype(jnp.float32)  # tiny: keep f32
    b1_cat = b1.reshape(1, n * h).astype(jnp.float32)
    w2_bd = _block_diag(w2).astype(weight_dtype)             # (n*h, n*h): dominant DMA
    b2_cat = b2.reshape(1, n * h).astype(jnp.float32)
    w3_bd = _block_diag(w3).astype(weight_dtype)             # (n*h, n*out)
    b3_cat = b3.reshape(1, n * out_sz).astype(jnp.float32)
    scale_row = jnp.repeat(scale, out_sz).reshape(1, n * out_sz)  # weighted-avg row
    return w1_cat, b1_cat, w2_bd, b2_cat, w3_bd, b3_cat, scale_row


@functools.partial(jax.jit, static_argnames="output_size")
def weighted_sigma(x, packed, *, output_size=1):
    """x: (B, input_size) f32.  packed: precomputed pack_fused_params() output."""
    w1_cat, b1_cat, w2_bd, b2_cat, w3_bd, b3_cat, scale_row = packed
    B = x.shape[0]
    nh = w2_bd.shape[0]
    n_out = scale_row.shape[1]

    # Advisory cost hint so XLA schedules this us-scale custom call sensibly.
    flops = 2 * B * (w1_cat.shape[0] * w1_cat.shape[1]
                     + w2_bd.shape[0] * w2_bd.shape[1]
                     + w3_bd.shape[0] * w3_bd.shape[1]
                     + n_out)
    transcendentals = B * (2 * nh + n_out)                   # tanh x2 + sigmoid
    bytes_accessed = (int(x.size) * x.dtype.itemsize
                      + sum(int(a.size) * a.dtype.itemsize for a in packed)
                      + B * output_size * 4)

    vmem = pl.BlockSpec(memory_space=pltpu.MemorySpace.VMEM)
    return pl.pallas_call(
        _weighted_sigma_fused_kernel,
        out_shape=jax.ShapeDtypeStruct((B, output_size), jnp.float32),
        in_specs=[vmem] * 8,
        out_specs=vmem,
        cost_estimate=pl.CostEstimate(flops=int(flops),
                                      transcendentals=int(transcendentals),
                                      bytes_accessed=int(bytes_accessed)),
        # NOTE: for n_train >~ 30-45 add
        #   compiler_params=pltpu.CompilerParams(vmem_limit_bytes=...)
        # and beyond the VMEM ceiling switch to a per-model pipelined grid.
    )(x, *packed)


# ---------------------------------------------------------------------------
# Parameter init (mimics PyTorch Linear U(-1/sqrt(fan_in), 1/sqrt(fan_in))).
# ---------------------------------------------------------------------------
def init_params(key, n_train, input_size, hidden_size, output_size):
    ks = jax.random.split(key, 6)

    def u(k, shape, fan_in):
        bound = 1.0 / jnp.sqrt(jnp.float32(fan_in))
        return jax.random.uniform(k, shape, jnp.float32, -bound, bound)

    w1 = u(ks[0], (n_train, input_size, hidden_size), input_size)
    b1 = u(ks[1], (n_train, hidden_size), input_size)
    w2 = u(ks[2], (n_train, hidden_size, hidden_size), hidden_size)
    b2 = u(ks[3], (n_train, hidden_size), hidden_size)
    w3 = u(ks[4], (n_train, hidden_size, output_size), hidden_size)
    b3 = u(ks[5], (n_train, output_size), hidden_size)
    return w1, b1, w2, b2, w3, b3


def reference(x, params, weights):
    """Pure-JAX reference matching the PyTorch forward."""
    w1, b1, w2, b2, w3, b3 = params
    inv_w = 1.0 / weights.astype(jnp.float32)
    y = jnp.zeros((x.shape[0], w3.shape[-1]), jnp.float32)
    for i in range(w1.shape[0]):
        h1 = jnp.tanh(x @ w1[i] + b1[i])
        h2 = jnp.tanh(h1 @ w2[i] + b2[i])
        o = jax.nn.sigmoid(h2 @ w3[i] + b3[i])
        y = y + inv_w[i] * o
    return y / jnp.sum(inv_w)


if __name__ == "__main__":
    n_train, input_size, hidden_size, output_size = 10, 1, 64, 1
    batch = 8   # weight-DMA bound: cost is ~flat in B, so batch as much as possible

    key = jax.random.PRNGKey(0)
    k_x, k_p = jax.random.split(key)

    x = jax.random.normal(k_x, (batch, input_size), dtype=jnp.float32)
    params = init_params(k_p, n_train, input_size, hidden_size, output_size)
    weights = jnp.ones((n_train,), dtype=jnp.float32)   # self.weights = torch.ones(n_train)

    y_ref = reference(x, params, weights)

    # --- exact-semantics check: f32 weight storage vs pure-JAX reference -----
    packed_f32 = jax.block_until_ready(
        pack_fused_params(params, weights, weight_dtype=jnp.float32))
    y_f32 = jax.block_until_ready(
        weighted_sigma(x, packed_f32, output_size=output_size))
    assert y_f32.shape == (batch, output_size)
    assert jnp.allclose(y_f32, y_ref, atol=1e-4, rtol=1e-4), (y_f32, y_ref)

    # --- production setting: bf16 weight storage (halves the dominant DMA) ---
    packed_bf16 = jax.block_until_ready(pack_fused_params(params, weights))  # default bf16
    y_bf16 = jax.block_until_ready(
        weighted_sigma(x, packed_bf16, output_size=output_size))
    assert y_bf16.shape == (batch, output_size)
    assert jnp.allclose(y_bf16, y_ref, atol=2e-2, rtol=2e-2), (y_bf16, y_ref)

    print("KERNEL_OK")
</pallas_src>

<mosaic_0001>
module attributes {stable_mosaic.version = 11 : i64} {
  func.func @_weighted_sigma_fused_kernel(%arg0: memref<8x1xf32, #tpu.memory_space<vmem>>, %arg1: memref<1x640xf32, #tpu.memory_space<vmem>>, %arg2: memref<1x640xf32, #tpu.memory_space<vmem>>, %arg3: memref<640x640xf32, #tpu.memory_space<vmem>>, %arg4: memref<1x640xf32, #tpu.memory_space<vmem>>, %arg5: memref<640x10xf32, #tpu.memory_space<vmem>>, %arg6: memref<1x10xf32, #tpu.memory_space<vmem>>, %arg7: memref<1x10xf32, #tpu.memory_space<vmem>>, %arg8: memref<8x1xf32, #tpu.memory_space<vmem>>) attributes {dimension_semantics = [], scalar_prefetch = 0 : i64, scratch_operands = 0 : i64, tpu.core_type = #tpu.core_type<tc>} {
    %c0 = arith.constant 0 : index
    %c0_0 = arith.constant 0 : index
    %0 = vector.load %arg0[%c0, %c0_0] : memref<8x1xf32, #tpu.memory_space<vmem>>, vector<8x1xf32>
    %c0_1 = arith.constant 0 : index
    %c0_2 = arith.constant 0 : index
    %1 = vector.load %arg1[%c0_1, %c0_2] : memref<1x640xf32, #tpu.memory_space<vmem>>, vector<1x640xf32>
    %2 = vector.broadcast %0 : vector<8x1xf32> to vector<8x640xf32>
    %3 = vector.broadcast %1 : vector<1x640xf32> to vector<8x640xf32>
    %4 = arith.mulf %2, %3 : vector<8x640xf32>
    %c0_3 = arith.constant 0 : index
    %c0_4 = arith.constant 0 : index
    %5 = vector.load %arg2[%c0_3, %c0_4] : memref<1x640xf32, #tpu.memory_space<vmem>>, vector<1x640xf32>
    %6 = vector.broadcast %5 : vector<1x640xf32> to vector<8x640xf32>
    %7 = arith.addf %4, %6 : vector<8x640xf32>
    %8 = math.tanh %7 : vector<8x640xf32>
    %c0_5 = arith.constant 0 : index
    %c0_6 = arith.constant 0 : index
    %9 = vector.load %arg3[%c0_5, %c0_6] : memref<640x640xf32, #tpu.memory_space<vmem>>, vector<640x640xf32>
    %cst = arith.constant dense<0.000000e+00> : vector<8x640xf32>
    %10 = tpu.matmul %8, %9, %cst {dimension_numbers = #tpu.dot_dimension_numbers<[1], [0], [0], [1], [0, 0, 1, 1], [], []>} : vector<8x640xf32>, vector<640x640xf32>, vector<8x640xf32> -> vector<8x640xf32>
    %c0_7 = arith.constant 0 : index
    %c0_8 = arith.constant 0 : index
    %11 = vector.load %arg4[%c0_7, %c0_8] : memref<1x640xf32, #tpu.memory_space<vmem>>, vector<1x640xf32>
    %12 = vector.broadcast %11 : vector<1x640xf32> to vector<8x640xf32>
    %13 = arith.addf %10, %12 : vector<8x640xf32>
    %14 = math.tanh %13 : vector<8x640xf32>
    %c0_9 = arith.constant 0 : index
    %c0_10 = arith.constant 0 : index
    %15 = vector.load %arg5[%c0_9, %c0_10] : memref<640x10xf32, #tpu.memory_space<vmem>>, vector<640x10xf32>
    %cst_11 = arith.constant dense<0.000000e+00> : vector<8x10xf32>
    %16 = tpu.matmul %14, %15, %cst_11 {dimension_numbers = #tpu.dot_dimension_numbers<[1], [0], [0], [1], [0, 0, 1, 1], [], []>} : vector<8x640xf32>, vector<640x10xf32>, vector<8x10xf32> -> vector<8x10xf32>
    %c0_12 = arith.constant 0 : index
    %c0_13 = arith.constant 0 : index
    %17 = vector.load %arg6[%c0_12, %c0_13] : memref<1x10xf32, #tpu.memory_space<vmem>>, vector<1x10xf32>
    %18 = vector.broadcast %17 : vector<1x10xf32> to vector<8x10xf32>
    %19 = arith.addf %16, %18 : vector<8x10xf32>
    %cst_14 = arith.constant 5.000000e-01 : f32
    %20 = vector.broadcast %cst_14 : f32 to vector<8x10xf32>
    %21 = arith.mulf %20, %19 : vector<8x10xf32>
    %22 = math.tanh %21 : vector<8x10xf32>
    %cst_15 = arith.constant 1.000000e+00 : f32
    %23 = vector.broadcast %cst_15 : f32 to vector<8x10xf32>
    %24 = arith.addf %22, %23 : vector<8x10xf32>
    %cst_16 = arith.constant 5.000000e-01 : f32
    %25 = vector.broadcast %cst_16 : f32 to vector<8x10xf32>
    %26 = arith.mulf %25, %24 : vector<8x10xf32>
    %c0_17 = arith.constant 0 : index
    %c0_18 = arith.constant 0 : index
    %27 = vector.load %arg7[%c0_17, %c0_18] : memref<1x10xf32, #tpu.memory_space<vmem>>, vector<1x10xf32>
    %28 = vector.broadcast %27 : vector<1x10xf32> to vector<8x10xf32>
    %29 = arith.mulf %26, %28 : vector<8x10xf32>
    %cst_19 = arith.constant dense<0.000000e+00> : vector<8xf32>
    %30 = vector.multi_reduction <add>, %29, %cst_19 [1] : vector<8x10xf32> to vector<8xf32>
    %31 = vector.shape_cast %30 : vector<8xf32> to vector<8x1xf32>
    %c0_20 = arith.constant 0 : index
    %c0_21 = arith.constant 0 : index
    %32 = vector.load %arg8[%c0_20, %c0_21] : memref<8x1xf32, #tpu.memory_space<vmem>>, vector<8x1xf32>
    tpu.vector_store %arg8[%c0_20, %c0_21], %31 {strides = array<i32>} : memref<8x1xf32, #tpu.memory_space<vmem>>, vector<8x1xf32>,
    return
  }
}

</mosaic_0001>

<bundles_post_ra>
// kernel: weighted_sigma.1
= control target key start
LH: loop header
LB: loop body
LE: loop exit
PB: predicated region body
PF: predicated region fallthrough
CT: control target
= control target key end

     0   :  { %13 = vsyncpa [#allocation3], 0  ;;  %s2963_s0 = inlined_call_operand.vmem [shape: f32[8,1], index: 0, kind: input, shape index: {}]   ;;  %s2964_s1 = inlined_call_operand.hbm [shape: f32[1,640], index: 1, kind: input, shape index: {}]   ;;  %s2965_s2 = inlined_call_operand.hbm [shape: f32[1,640], index: 2, kind: input, shape index: {}]   ;;  %s2966_s3 = inlined_call_operand.hbm [shape: f32[640,640], index: 3, kind: input, shape index: {}]   ;;  %s2967_s4 = inlined_call_operand.hbm [shape: f32[1,640], index: 4, kind: input, shape index: {}]   ;;  %s2968_s5 = inlined_call_operand.vmem [shape: f32[640,10], index: 5, kind: input, shape index: {}]   ;;  %s2969_s6 = inlined_call_operand.hbm [shape: f32[1,10], index: 6, kind: input, shape index: {}]   ;;  %s2970_s7 = inlined_call_operand.hbm [shape: f32[1,10], index: 7, kind: input, shape index: {}]   ;;  %s2971_s8 = inlined_call_operand.vmem [shape: f32[8,1], index: 8, kind: output, shape index: {}]  }
   0x1   :  { %14 = vsyncpa [#allocation5], 0 }
   0x2   :  { %15 = vsyncpa [#allocation8], 0 }
   0x3   :  { %16 = vsyncpa [#allocation11], 0  ;;  %s2496_s27 = smov [#allocation4]   ;;  %s2497_s29 = smov [#allocation7]  }
   0x4   :  { %s35_s28 = sshll.u32 %s2496_s27, 4  ;;  %s57_s30 = sshll.u32 %s2497_s29, 4  ;;  %s36_s28 = int_to_ptr.vmem [resolvable:$true] %s35_s28  ;;  %s58_s30 = int_to_ptr.vmem [resolvable:$true] %s57_s30 }
   0x5   :  { %s2356_s11 = scalar_lea.hbm %s2965_s2, 80 }
   0x6   :  { %p2357_p0 = scmp.ne.s32.totalorder %s2965_s2, %s2356_s11  ;;  %p2360_p1 = scmp.lt.u32.totalorder %s2356_s11, %s2965_s2 }
   0x8   :  { %p2362_p2 = pnand %p2360_p1, %p2357_p0 }
   0xa   :  { %2365 = shalt.err (!%p2362_p2)
}
   0xb   :  { %s2366_s16 = scalar_lea.vmem %s36_s28, 80  ;;  %s2370_s17 = scalar_lea.vmem %s36_s28, 96 }
   0xc   :  { %p2367_p3 = scmp.ne.s32.totalorder %s36_s28, %s2366_s16  ;;  %p2371_p4 = scmp.lt.s32.totalorder %s36_s28, %s36_s28 }
   0xd   :  { %p2372_p5 = scmp.lt.s32.totalorder %s2370_s17, %s2366_s16 }
   0xf   :  { %p2373_p6 = por %p2372_p5, %p2371_p4 }
  0x11   :  { %p2374_p7 = pnand %p2373_p6, %p2367_p3 }
  0x13   :  { %2377 = shalt.err (!%p2374_p7)
}
  0x14   :  { %38 = dma.hbm_to_vmem [thread:$0]  %s2965_s2, 80, %s36_s28, [#allocation5]  }
  0x15   :  { %s2378_s22 = scalar_lea.hbm %s2967_s4, 80 }
  0x16   :  { %p2379_p8 = scmp.ne.s32.totalorder %s2967_s4, %s2378_s22  ;;  %p2382_p9 = scmp.lt.u32.totalorder %s2378_s22, %s2967_s4 }
  0x18   :  { %p2384_p10 = pnand %p2382_p9, %p2379_p8 }
  0x1a   :  { %2387 = shalt.err (!%p2384_p10)
}
  0x1b   :  { %s2388_s27 = scalar_lea.vmem %s58_s30, 80  ;;  %s2392_s29 = scalar_lea.vmem %s58_s30, 96 }
  0x1c   :  { %p2389_p11 = scmp.ne.s32.totalorder %s58_s30, %s2388_s27  ;;  %p2393_p12 = scmp.lt.s32.totalorder %s58_s30, %s58_s30 }
  0x1d   :  { %p2394_p13 = scmp.lt.s32.totalorder %s2392_s29, %s2388_s27 }
  0x1f   :  { %p2395_p0 = por %p2394_p13, %p2393_p12 }
  0x21   :  { %p2396_p1 = pnand %p2395_p0, %p2389_p11 }
  0x23   :  { %2399 = shalt.err (!%p2396_p1)
}
  0x24   :  { %60 = dma.hbm_to_vmem [thread:$0]  %s2967_s4, 80, %s58_s30, [#allocation8]  }
  0x25   :  { %s2498_s9 = smov [#allocation2]   ;;  %s2499_s11 = smov [#allocation6]  }
  0x26   :  { %s25_s10 = sshll.u32 %s2498_s9, 4  ;;  %s44_s12 = sshll.u32 %s2499_s11, 4  ;;  %s26_s10 = int_to_ptr.vmem [resolvable:$true] %s25_s10  ;;  %s2577_s12 = int_to_ptr.vmem [resolvable:$true] %s44_s12 }
  0x27   :  { %s2400_s15 = scalar_lea.hbm %s2964_s1, 80 }
  0x28   :  { %p2401_p2 = scmp.ne.s32.totalorder %s2964_s1, %s2400_s15  ;;  %p2404_p3 = scmp.lt.u32.totalorder %s2400_s15, %s2964_s1 }
  0x2a   :  { %p2406_p4 = pnand %p2404_p3, %p2401_p2 }
  0x2c   :  { %2409 = shalt.err (!%p2406_p4)
}
  0x2d   :  { %s2410_s4 = scalar_lea.vmem %s26_s10, 80  ;;  %s2414_s30 = scalar_lea.vmem %s26_s10, 96 }
  0x2e   :  { %p2411_p5 = scmp.ne.s32.totalorder %s26_s10, %s2410_s4  ;;  %p2415_p6 = scmp.lt.s32.totalorder %s26_s10, %s26_s10 }
  0x2f   :  { %p2416_p7 = scmp.lt.s32.totalorder %s2414_s30, %s2410_s4 }
  0x31   :  { %p2417_p8 = por %p2416_p7, %p2415_p6 }
  0x33   :  { %p2418_p9 = pnand %p2417_p8, %p2411_p5 }
  0x35   :  { %2421 = shalt.err (!%p2418_p9)
}
  0x36   :  { %28 = dma.hbm_to_vmem [thread:$0]  %s2964_s1, 80, %s26_s10, [#allocation3]  }
  0x37   :  { %s2422_s24 = scalar_lea.hbm %s2966_s3, 51200 }
  0x38   :  { %p2423_p10 = scmp.ne.s32.totalorder %s2966_s3, %s2422_s24  ;;  %p2426_p11 = scmp.lt.u32.totalorder %s2422_s24, %s2966_s3 }
  0x3a   :  { %p2428_p12 = pnand %p2426_p11, %p2423_p10 }
  0x3c   :  { %2431 = shalt.err (!%p2428_p12)
}
  0x3d   :  { %s2432_s2 = scalar_lea.vmem %s2577_s12, 51200  ;;  %p2437_p0 = scmp.lt.s32.totalorder %s2577_s12, %s2577_s12 }
  0x3e   :  { %p2433_p13 = scmp.ne.s32.totalorder %s2577_s12, %s2432_s2  ;;  %p2438_p1 = scmp.lt.s32.totalorder %s2432_s2, %s2432_s2 }
  0x40   :  { %p2439_p2 = por %p2438_p1, %p2437_p0 }
  0x42   :  { %p2440_p3 = pnand %p2439_p2, %p2433_p13 }
  0x44   :  { %2443 = shalt.err (!%p2440_p3)
}
  0x45   :  { %s2500_s1 = smov 640   ;;  %s2501_s28 = smov 40  }
  0x46   :  { %50 = dma.hbm_to_vmem [thread:$0]  %s2966_s3, 51200, %s2577_s12, [#allocation5], %s2500_s1, %s2500_s1, %s2501_s28  }
  0x47   :  { %s2502_s11 = smov [#allocation9]   ;;  %s2503_s14 = smov [#allocation10]  }
  0x48   :  { %s69_s13 = sshll.u32 %s2502_s11, 4  ;;  %s79_s15 = sshll.u32 %s2503_s14, 4  ;;  %s70_s13 = int_to_ptr.vmem [resolvable:$true] %s69_s13  ;;  %s80_s15 = int_to_ptr.vmem [resolvable:$true] %s79_s15 }
  0x49   :  { %s2444_s18 = scalar_lea.hbm %s2969_s6, 16 }
  0x4a   :  { %p2445_p4 = scmp.ne.s32.totalorder %s2969_s6, %s2444_s18  ;;  %p2448_p5 = scmp.lt.u32.totalorder %s2444_s18, %s2969_s6 }
  0x4c   :  { %p2450_p6 = pnand %p2448_p5, %p2445_p4 }
  0x4e   :  { %2453 = shalt.err (!%p2450_p6)
}
  0x4f   :  { %s2454_s3 = scalar_lea.vmem %s70_s13, 16  ;;  %s2458_s12 = scalar_lea.vmem %s70_s13, 32 }
  0x50   :  { %p2455_p7 = scmp.ne.s32.totalorder %s70_s13, %s2454_s3  ;;  %p2459_p8 = scmp.lt.s32.totalorder %s70_s13, %s70_s13 }
  0x51   :  { %p2460_p9 = scmp.lt.s32.totalorder %s2458_s12, %s2454_s3 }
  0x53   :  { %p2461_p10 = por %p2460_p9, %p2459_p8 }
  0x55   :  { %p2462_p11 = pnand %p2461_p10, %p2455_p7 }
  0x57   :  { %2465 = shalt.err (!%p2462_p11)
}
  0x58   :  { %72 = dma.hbm_to_vmem [thread:$0]  %s2969_s6, 16, %s70_s13, [#allocation8]  }
  0x59   :  { %s2466_s25 = scalar_lea.hbm %s2970_s7, 16 }
  0x5a   :  { %p2467_p12 = scmp.ne.s32.totalorder %s2970_s7, %s2466_s25  ;;  %p2470_p13 = scmp.lt.u32.totalorder %s2466_s25, %s2970_s7 }
  0x5c   :  { %p2472_p0 = pnand %p2470_p13, %p2467_p12 }
  0x5e   :  { %2475 = shalt.err (!%p2472_p0)
}
  0x5f   :  { %s2476_s1 = scalar_lea.vmem %s80_s15, 16  ;;  %s2480_s28 = scalar_lea.vmem %s80_s15, 32 }
  0x60   :  { %p2477_p1 = scmp.ne.s32.totalorder %s80_s15, %s2476_s1  ;;  %p2481_p2 = scmp.lt.s32.totalorder %s80_s15, %s80_s15 }
  0x61   :  { %p2482_p3 = scmp.lt.s32.totalorder %s2480_s28, %s2476_s1 }
  0x63   :  { %p2483_p4 = por %p2482_p3, %p2481_p2 }
  0x65   :  { %p2484_p5 = pnand %p2483_p4, %p2477_p1 }
  0x67   :  { %2487 = shalt.err (!%p2484_p5)
}
  0x68   :  { %82 = dma.hbm_to_vmem [thread:$0]  %s2970_s7, 16, %s80_s15, [#allocation11]  }
  0x69   :  { %2488 = dma.done.wait [#allocation3], 80  }
  0x6a   :  { %2489 = vsyncadd [#allocation3], 4294967216 }
  0x6b   :  { %2490 = dma.done.wait [#allocation5], 51280  }
  0x6c   :  { %2491 = vsyncadd [#allocation5], 4294916016 }
  0x6d   :  { %2492 = dma.done.wait [#allocation8], 96  }
  0x6e   :  { %2493 = vsyncadd [#allocation8], 4294967200 }
  0x6f   :  { %2494 = dma.done.wait [#allocation11], 16  }
  0x70   :  { %2495 = vsyncadd [#allocation11], 4294967280  ;;  %v2504_v0 = vmov 0   ;;  %v101_v1 = vld [vmem:[%s2963_s0] sm:$0xff]  ;;  %v177_v2 = vld [vmem:[#allocation6 + $0x8] sm:$0xff]  ;;  %vm2507_vm0 = vmmov 0  }
  0x71   :  { %2333 = vset.pattern.permute.xlu0 %v2504_v0  ;;  %v182_v3 = vld [vmem:[#allocation6 + $0x30] sm:$0xff]  ;;  %v179_v5 = vld [vmem:[#allocation6 + $0x18] sm:$0xff]  ;;  %v184_v6 = vld [vmem:[#allocation6 + $0x40] sm:$0xff]  ;;  %vm1553_vm1 = vcmask 80896   ;;  %vm1557_vm2 = vcmask 7168  }
  0x72   :  { %105 = vperm.xlu0 %2333, %v101_v1   ;;  %v1813_v4 = vpack.c.bf16 %v182_v3, %v177_v2  ;;  %v176_v7 = vld [vmem:[#allocation6] sm:$0xff]  ;;  %v1973_v8 = vpack.c.bf16 %v184_v6, %v179_v5  ;;  %v181_v9 = vld [vmem:[#allocation6 + $0x28] sm:$0xff]  ;;  %v178_v10 = vld [vmem:[#allocation6 + $0x10] sm:$0xff] }
  0x73   :  { %v183_v11 = vld [vmem:[#allocation6 + $0x38] sm:$0xff]  ;;  %v1815_v12 = vpack.c.bf16 %v181_v9, %v176_v7  ;;  %v192_v15 = vld [vmem:[#allocation6 + $0x80] sm:$0xff]  ;;  %v189_v16 = vld [vmem:[#allocation6 + $0x68] sm:$0xff] }
  0x74   :  { %1814 = vmatprep.subr.bf16.mxu0 %v1813_v4  ;;  %v1975_v13 = vpack.c.bf16 %v183_v11, %v178_v10  ;;  %v187_v14 = vld [vmem:[#allocation6 + $0x58] sm:$0xff]  ;;  %1974 = vmatprep.subr.bf16.mxu1 %v1973_v8  ;;  %v194_v18 = vld [vmem:[#allocation6 + $0x90] sm:$0xff]  ;;  %v188_v23 = vld [vmem:[#allocation6 + $0x60] sm:$0xff] }
  0x75   :  { %v1817_v17 = vpack.c.bf16 %v192_v15, %v187_v14  ;;  %v186_v19 = vld [vmem:[#allocation6 + $0x50] sm:$0xff]  ;;  %v191_v20 = vld [vmem:[#allocation6 + $0x78] sm:$0xff]  ;;  %1816 = vmatpush1.bf16.msra.mxu0 %v1815_v12  ;;  %v1977_v21 = vpack.c.bf16 %v194_v18, %v189_v16  ;;  %v193_v24 = vld [vmem:[#allocation6 + $0x88] sm:$0xff] }
  0x76   :  { %1976 = vmatpush1.bf16.msra.mxu1 %v1975_v13  ;;  %v1819_v22 = vpack.c.bf16 %v191_v20, %v186_v19  ;;  %v197_v25 = vld [vmem:[#allocation6 + $0xa8] sm:$0xff]  ;;  %v1979_v26 = vpack.c.bf16 %v193_v24, %v188_v23  ;;  %v202_v27 = vld [vmem:[#allocation6 + $0xd0] sm:$0xff]  ;;  %v199_v28 = vld [vmem:[#allocation6 + $0xb8] sm:$0xff] }
  0x77   :  { %1818 = vmatprep.subr.bf16.mxu0 %v1817_v17  ;;  %v204_v29 = vld [vmem:[#allocation6 + $0xe0] sm:$0xff]  ;;  %1978 = vmatprep.subr.bf16.mxu1 %v1977_v21  ;;  %v1821_v30 = vpack.c.bf16 %v202_v27, %v197_v25  ;;  %v201_v33 = vld [vmem:[#allocation6 + $0xc8] sm:$0xff]  ;;  %v198_v34 = vld [vmem:[#allocation6 + $0xb0] sm:$0xff] }
  0x78   :  { %v1981_v31 = vpack.c.bf16 %v204_v29, %v199_v28  ;;  %v196_v32 = vld [vmem:[#allocation6 + $0xa0] sm:$0xff]  ;;  %v203_v35 = vld [vmem:[#allocation6 + $0xd8] sm:$0xff]  ;;  %v209_v40 = vld [vmem:[#allocation6 + $0x108] sm:$0xff] }
  0x79   :  { %v207_v36 = vld [vmem:[#allocation6 + $0xf8] sm:$0xff]  ;;  %v212_v37 = vld [vmem:[#allocation6 + $0x120] sm:$0xff]  ;;  %1820 = vmatpush1.bf16.msra.mxu0 %v1819_v22  ;;  %v1823_v38 = vpack.c.bf16 %v201_v33, %v196_v32  ;;  %v1983_v39 = vpack.c.bf16 %v203_v35, %v198_v34  ;;  %v214_v41 = vld [vmem:[#allocation6 + $0x130] sm:$0xff] }
  0x7a   :  { %1980 = vmatpush1.bf16.msra.mxu1 %v1979_v26  ;;  %v206_v42 = vld [vmem:[#allocation6 + $0xf0] sm:$0xff]  ;;  %1822 = vmatprep.subr.bf16.mxu0 %v1821_v30  ;;  %v1825_v43 = vpack.c.bf16 %v212_v37, %v207_v36  ;;  %v1985_v44 = vpack.c.bf16 %v214_v41, %v209_v40  ;;  %v211_v45 = vld [vmem:[#allocation6 + $0x118] sm:$0xff]  ;;  %v208_v46 = vld [vmem:[#allocation6 + $0x100] sm:$0xff] }
  0x7b   :  { %1982 = vmatprep.subr.bf16.mxu1 %v1981_v31  ;;  %v213_v47 = vld [vmem:[#allocation6 + $0x128] sm:$0xff]  ;;  %v222_v49 = vld [vmem:[#allocation6 + $0x170] sm:$0xff]  ;;  %v219_v50 = vld [vmem:[#allocation6 + $0x158] sm:$0xff]  ;;  %v1827_v52 = vpack.c.bf16 %v211_v45, %v206_v42 }
  0x7c   :  { %v217_v48 = vld [vmem:[#allocation6 + $0x148] sm:$0xff]  ;;  %v224_v51 = vld [vmem:[#allocation6 + $0x180] sm:$0xff]  ;;  %v1987_v53 = vpack.c.bf16 %v213_v47, %v208_v46  ;;  %v218_v58 = vld [vmem:[#allocation6 + $0x150] sm:$0xff] }
  0x7d   :  { %1824 = vmatpush1.bf16.msra.mxu0 %v1823_v38  ;;  %v216_v54 = vld [vmem:[#allocation6 + $0x140] sm:$0xff]  ;;  %v221_v55 = vld [vmem:[#allocation6 + $0x168] sm:$0xff]  ;;  %v1829_v56 = vpack.c.bf16 %v222_v49, %v217_v48  ;;  %v1989_v57 = vpack.c.bf16 %v224_v51, %v219_v50  ;;  %v223_v59 = vld [vmem:[#allocation6 + $0x178] sm:$0xff] }
  0x7e   :  { %1984 = vmatpush1.bf16.msra.mxu1 %v1983_v39  ;;  %1826 = vmatprep.subr.bf16.mxu0 %v1825_v43  ;;  %v227_v60 = vld [vmem:[#allocation6 + $0x198] sm:$0xff]  ;;  %v232_v61 = vld [vmem:[#allocation6 + $0x1c0] sm:$0xff]  ;;  %v229_v62 = vld [vmem:[#allocation6 + $0x1a8] sm:$0xff]  ;;  %v1831_v0 = vpack.c.bf16 %v221_v55, %v216_v54  ;;  %v1991_v1 = vpack.c.bf16 %v223_v59, %v218_v58 }
  0x7f   :  { %1986 = vmatprep.subr.bf16.mxu1 %v1985_v44  ;;  %v234_v63 = vld [vmem:[#allocation6 + $0x1d0] sm:$0xff]  ;;  %v231_v3 = vld [vmem:[#allocation6 + $0x1b8] sm:$0xff]  ;;  %v1833_v4 = vpack.c.bf16 %v232_v61, %v227_v60  ;;  %v228_v6 = vld [vmem:[#allocation6 + $0x1a0] sm:$0xff] }
  0x80   :  { %v226_v2 = vld [vmem:[#allocation6 + $0x190] sm:$0xff]  ;;  %v1993_v5 = vpack.c.bf16 %v234_v63, %v229_v62  ;;  %v233_v7 = vld [vmem:[#allocation6 + $0x1c8] sm:$0xff]  ;;  %v239_v10 = vld [vmem:[#allocation6 + $0x1f8] sm:$0xff] }
  0x81   :  { %1828 = vmatpush1.bf16.msra.mxu0 %v1827_v52  ;;  %v237_v8 = vld [vmem:[#allocation6 + $0x1e8] sm:$0xff]  ;;  %v242_v9 = vld [vmem:[#allocation6 + $0x210] sm:$0xff]  ;;  %v244_v11 = vld [vmem:[#allocation6 + $0x220] sm:$0xff]  ;;  %v1835_v12 = vpack.c.bf16 %v231_v3, %v226_v2  ;;  %v1995_v13 = vpack.c.bf16 %v233_v7, %v228_v6 }
  0x82   :  { %1988 = vmatpush1.bf16.msra.mxu1 %v1987_v53  ;;  %1830 = vmatprep.subr.bf16.mxu0 %v1829_v56  ;;  %v236_v14 = vld [vmem:[#allocation6 + $0x1e0] sm:$0xff]  ;;  %v241_v15 = vld [vmem:[#allocation6 + $0x208] sm:$0xff]  ;;  %v1837_v16 = vpack.c.bf16 %v242_v9, %v237_v8  ;;  %v1997_v17 = vpack.c.bf16 %v244_v11, %v239_v10  ;;  %v238_v18 = vld [vmem:[#allocation6 + $0x1f0] sm:$0xff] }
  0x83   :  { %1990 = vmatprep.subr.bf16.mxu1 %v1989_v57  ;;  %v243_v19 = vld [vmem:[#allocation6 + $0x218] sm:$0xff]  ;;  %v252_v21 = vld [vmem:[#allocation6 + $0x260] sm:$0xff]  ;;  %v249_v22 = vld [vmem:[#allocation6 + $0x248] sm:$0xff]  ;;  %v1839_v24 = vpack.c.bf16 %v241_v15, %v236_v14 }
  0x84   :  { %v247_v20 = vld [vmem:[#allocation6 + $0x238] sm:$0xff]  ;;  %v254_v23 = vld [vmem:[#allocation6 + $0x270] sm:$0xff]  ;;  %v1999_v25 = vpack.c.bf16 %v243_v19, %v238_v18  ;;  %v248_v30 = vld [vmem:[#allocation6 + $0x240] sm:$0xff] }
  0x85   :  { %1832 = vmatpush1.bf16.msra.mxu0 %v1831_v0  ;;  %v246_v26 = vld [vmem:[#allocation6 + $0x230] sm:$0xff]  ;;  %v251_v27 = vld [vmem:[#allocation6 + $0x258] sm:$0xff]  ;;  %v1841_v28 = vpack.c.bf16 %v252_v21, %v247_v20  ;;  %v2001_v29 = vpack.c.bf16 %v254_v23, %v249_v22  ;;  %v253_v31 = vld [vmem:[#allocation6 + $0x268] sm:$0xff] }
  0x86   :  { %1992 = vmatpush1.bf16.msra.mxu1 %v1991_v1  ;;  %1834 = vmatprep.subr.bf16.mxu0 %v1833_v4  ;;  %v257_v32 = vld [vmem:[#allocation6 + $0x288] sm:$0xff]  ;;  %v262_v33 = vld [vmem:[#allocation6 + $0x2b0] sm:$0xff]  ;;  %v259_v34 = vld [vmem:[#allocation6 + $0x298] sm:$0xff]  ;;  %v1843_v36 = vpack.c.bf16 %v251_v27, %v246_v26  ;;  %v2003_v37 = vpack.c.bf16 %v253_v31, %v248_v30 }
  0x87   :  { %1994 = vmatprep.subr.bf16.mxu1 %v1993_v5  ;;  %v264_v35 = vld [vmem:[#allocation6 + $0x2c0] sm:$0xff]  ;;  %v261_v39 = vld [vmem:[#allocation6 + $0x2a8] sm:$0xff]  ;;  %v1845_v40 = vpack.c.bf16 %v262_v33, %v257_v32  ;;  %v258_v42 = vld [vmem:[#allocation6 + $0x290] sm:$0xff] }
  0x88   :  { %v256_v38 = vld [vmem:[#allocation6 + $0x280] sm:$0xff]  ;;  %v2005_v41 = vpack.c.bf16 %v264_v35, %v259_v34  ;;  %v263_v43 = vld [vmem:[#allocation6 + $0x2b8] sm:$0xff]  ;;  %v269_v46 = vld [vmem:[#allocation6 + $0x2e8] sm:$0xff] }
  0x89   :  { %1836 = vmatpush1.bf16.msra.mxu0 %v1835_v12  ;;  %v267_v44 = vld [vmem:[#allocation6 + $0x2d8] sm:$0xff]  ;;  %v272_v45 = vld [vmem:[#allocation6 + $0x300] sm:$0xff]  ;;  %v274_v47 = vld [vmem:[#allocation6 + $0x310] sm:$0xff]  ;;  %v1847_v48 = vpack.c.bf16 %v261_v39, %v256_v38  ;;  %v2007_v49 = vpack.c.bf16 %v263_v43, %v258_v42 }
  0x8a   :  { %1996 = vmatpush1.bf16.msra.mxu1 %v1995_v13  ;;  %1838 = vmatprep.subr.bf16.mxu0 %v1837_v16  ;;  %v266_v50 = vld [vmem:[#allocation6 + $0x2d0] sm:$0xff]  ;;  %v271_v51 = vld [vmem:[#allocation6 + $0x2f8] sm:$0xff]  ;;  %v1849_v52 = vpack.c.bf16 %v272_v45, %v267_v44  ;;  %v2009_v53 = vpack.c.bf16 %v274_v47, %v269_v46  ;;  %v268_v54 = vld [vmem:[#allocation6 + $0x2e0] sm:$0xff] }
  0x8b   :  { %1998 = vmatprep.subr.bf16.mxu1 %v1997_v17  ;;  %v273_v55 = vld [vmem:[#allocation6 + $0x308] sm:$0xff]  ;;  %v282_v57 = vld [vmem:[#allocation6 + $0x350] sm:$0xff]  ;;  %v279_v58 = vld [vmem:[#allocation6 + $0x338] sm:$0xff]  ;;  %v1851_v60 = vpack.c.bf16 %v271_v51, %v266_v50 }
  0x8c   :  { %v277_v56 = vld [vmem:[#allocation6 + $0x328] sm:$0xff]  ;;  %v284_v59 = vld [vmem:[#allocation6 + $0x360] sm:$0xff]  ;;  %v2011_v61 = vpack.c.bf16 %v273_v55, %v268_v54  ;;  %v278_v2 = vld [vmem:[#allocation6 + $0x330] sm:$0xff] }
  0x8d   :  { %1840 = vmatpush1.bf16.msra.mxu0 %v1839_v24  ;;  %v276_v62 = vld [vmem:[#allocation6 + $0x320] sm:$0xff]  ;;  %v281_v63 = vld [vmem:[#allocation6 + $0x348] sm:$0xff]  ;;  %v1853_v0 = vpack.c.bf16 %v282_v57, %v277_v56  ;;  %v2013_v1 = vpack.c.bf16 %v284_v59, %v279_v58  ;;  %v283_v3 = vld [vmem:[#allocation6 + $0x358] sm:$0xff] }
  0x8e   :  { %2000 = vmatpush1.bf16.msra.mxu1 %v1999_v25  ;;  %1842 = vmatprep.subr.bf16.mxu0 %v1841_v28  ;;  %v287_v4 = vld [vmem:[#allocation6 + $0x378] sm:$0xff]  ;;  %v292_v5 = vld [vmem:[#allocation6 + $0x3a0] sm:$0xff]  ;;  %v289_v6 = vld [vmem:[#allocation6 + $0x388] sm:$0xff]  ;;  %v1855_v8 = vpack.c.bf16 %v281_v63, %v276_v62  ;;  %v2015_v9 = vpack.c.bf16 %v283_v3, %v278_v2 }
  0x8f   :  { %2002 = vmatprep.subr.bf16.mxu1 %v2001_v29  ;;  %v294_v7 = vld [vmem:[#allocation6 + $0x3b0] sm:$0xff]  ;;  %v291_v11 = vld [vmem:[#allocation6 + $0x398] sm:$0xff]  ;;  %v1857_v12 = vpack.c.bf16 %v292_v5, %v287_v4  ;;  %v288_v14 = vld [vmem:[#allocation6 + $0x380] sm:$0xff] }
  0x90   :  { %v286_v10 = vld [vmem:[#allocation6 + $0x370] sm:$0xff]  ;;  %v2017_v13 = vpack.c.bf16 %v294_v7, %v289_v6  ;;  %v293_v15 = vld [vmem:[#allocation6 + $0x3a8] sm:$0xff]  ;;  %v299_v18 = vld [vmem:[#allocation6 + $0x3d8] sm:$0xff] }
  0x91   :  { %1844 = vmatpush1.bf16.msra.mxu0 %v1843_v36  ;;  %v297_v16 = vld [vmem:[#allocation6 + $0x3c8] sm:$0xff]  ;;  %v302_v17 = vld [vmem:[#allocation6 + $0x3f0] sm:$0xff]  ;;  %v304_v19 = vld [vmem:[#allocation6 + $0x400] sm:$0xff]  ;;  %v1859_v20 = vpack.c.bf16 %v291_v11, %v286_v10  ;;  %v2019_v21 = vpack.c.bf16 %v293_v15, %v288_v14 }
  0x92   :  { %2004 = vmatpush1.bf16.msra.mxu1 %v2003_v37  ;;  %1846 = vmatprep.subr.bf16.mxu0 %v1845_v40  ;;  %v296_v22 = vld [vmem:[#allocation6 + $0x3c0] sm:$0xff]  ;;  %v301_v23 = vld [vmem:[#allocation6 + $0x3e8] sm:$0xff]  ;;  %v1861_v24 = vpack.c.bf16 %v302_v17, %v297_v16  ;;  %v2021_v25 = vpack.c.bf16 %v304_v19, %v299_v18  ;;  %v298_v26 = vld [vmem:[#allocation6 + $0x3d0] sm:$0xff] }
  0x93   :  { %2006 = vmatprep.subr.bf16.mxu1 %v2005_v41  ;;  %v303_v27 = vld [vmem:[#allocation6 + $0x3f8] sm:$0xff]  ;;  %v312_v29 = vld [vmem:[#allocation6 + $0x440] sm:$0xff]  ;;  %v309_v30 = vld [vmem:[#allocation6 + $0x428] sm:$0xff]  ;;  %v1863_v32 = vpack.c.bf16 %v301_v23, %v296_v22 }
  0x94   :  { %v307_v28 = vld [vmem:[#allocation6 + $0x418] sm:$0xff]  ;;  %v314_v31 = vld [vmem:[#allocation6 + $0x450] sm:$0xff]  ;;  %v2023_v33 = vpack.c.bf16 %v303_v27, %v298_v26  ;;  %v308_v38 = vld [vmem:[#allocation6 + $0x420] sm:$0xff] }
  0x95   :  { %1848 = vmatpush1.bf16.msra.mxu0 %v1847_v48  ;;  %v306_v34 = vld [vmem:[#allocation6 + $0x410] sm:$0xff]  ;;  %v311_v35 = vld [vmem:[#allocation6 + $0x438] sm:$0xff]  ;;  %v1865_v36 = vpack.c.bf16 %v312_v29, %v307_v28  ;;  %v2025_v37 = vpack.c.bf16 %v314_v31, %v309_v30  ;;  %v313_v39 = vld [vmem:[#allocation6 + $0x448] sm:$0xff] }
  0x96   :  { %2008 = vmatpush1.bf16.msra.mxu1 %v2007_v49  ;;  %1850 = vmatprep.subr.bf16.mxu0 %v1849_v52  ;;  %v317_v40 = vld [vmem:[#allocation6 + $0x468] sm:$0xff]  ;;  %v322_v41 = vld [vmem:[#allocation6 + $0x490] sm:$0xff]  ;;  %v319_v42 = vld [vmem:[#allocation6 + $0x478] sm:$0xff]  ;;  %v1867_v44 = vpack.c.bf16 %v311_v35, %v306_v34  ;;  %v2027_v45 = vpack.c.bf16 %v313_v39, %v308_v38 }
  0x97   :  { %2010 = vmatprep.subr.bf16.mxu1 %v2009_v53  ;;  %v324_v43 = vld [vmem:[#allocation6 + $0x4a0] sm:$0xff]  ;;  %v321_v47 = vld [vmem:[#allocation6 + $0x488] sm:$0xff]  ;;  %v1869_v48 = vpack.c.bf16 %v322_v41, %v317_v40  ;;  %v318_v50 = vld [vmem:[#allocation6 + $0x470] sm:$0xff] }
  0x98   :  { %v316_v46 = vld [vmem:[#allocation6 + $0x460] sm:$0xff]  ;;  %v2029_v49 = vpack.c.bf16 %v324_v43, %v319_v42  ;;  %v323_v51 = vld [vmem:[#allocation6 + $0x498] sm:$0xff]  ;;  %v329_v54 = vld [vmem:[#allocation6 + $0x4c8] sm:$0xff] }
  0x99   :  { %1852 = vmatpush1.bf16.msra.mxu0 %v1851_v60  ;;  %v327_v52 = vld [vmem:[#allocation6 + $0x4b8] sm:$0xff]  ;;  %v332_v53 = vld [vmem:[#allocation6 + $0x4e0] sm:$0xff]  ;;  %v334_v55 = vld [vmem:[#allocation6 + $0x4f0] sm:$0xff]  ;;  %v1871_v56 = vpack.c.bf16 %v321_v47, %v316_v46  ;;  %v2031_v57 = vpack.c.bf16 %v323_v51, %v318_v50 }
  0x9a   :  { %2012 = vmatpush1.bf16.msra.mxu1 %v2011_v61  ;;  %1854 = vmatprep.subr.bf16.mxu0 %v1853_v0  ;;  %v326_v58 = vld [vmem:[#allocation6 + $0x4b0] sm:$0xff]  ;;  %v331_v59 = vld [vmem:[#allocation6 + $0x4d8] sm:$0xff]  ;;  %v1873_v60 = vpack.c.bf16 %v332_v53, %v327_v52  ;;  %v2033_v61 = vpack.c.bf16 %v334_v55, %v329_v54  ;;  %v328_v62 = vld [vmem:[#allocation6 + $0x4c0] sm:$0xff] }
  0x9b   :  { %2014 = vmatprep.subr.bf16.mxu1 %v2013_v1  ;;  %v333_v63 = vld [vmem:[#allocation6 + $0x4e8] sm:$0xff]  ;;  %v342_v1 = vld [vmem:[#allocation6 + $0x530] sm:$0xff]  ;;  %v339_v2 = vld [vmem:[#allocation6 + $0x518] sm:$0xff]  ;;  %v1875_v4 = vpack.c.bf16 %v331_v59, %v326_v58 }
  0x9c   :  { %v337_v0 = vld [vmem:[#allocation6 + $0x508] sm:$0xff]  ;;  %v344_v3 = vld [vmem:[#allocation6 + $0x540] sm:$0xff]  ;;  %v2035_v5 = vpack.c.bf16 %v333_v63, %v328_v62  ;;  %v102_v14 = vld [vmem:[#allocation2] sm:$0x1f] }
  0x9d   :  { %1856 = vmatpush1.bf16.msra.mxu0 %v1855_v8  ;;  %v1877_v6 = vpack.c.bf16 %v342_v1, %v337_v0  ;;  %v2037_v7 = vpack.c.bf16 %v344_v3, %v339_v2  ;;  %v109_v8 = vlaneseq  ;;  %v139_v16 = vld [vmem:[#allocation4] sm:$0x1f]  ;;  %v336_v38 = vld [vmem:[#allocation6 + $0x500] sm:$0xff]  ;;  %v341_v39 = vld [vmem:[#allocation6 + $0x528] sm:$0xff] }
  0x9e   :  { %2016 = vmatpush1.bf16.msra.mxu1 %v2015_v9  ;;  %1858 = vmatprep.subr.bf16.mxu0 %v1857_v12  ;;  %v338_v40 = vld [vmem:[#allocation6 + $0x510] sm:$0xff]  ;;  %v343_v41 = vld [vmem:[#allocation6 + $0x538] sm:$0xff]  ;;  %v352_v43 = vld [vmem:[#allocation6 + $0x580] sm:$0xff]  ;;  %v1879_v47 = vpack.c.bf16 %v341_v39, %v336_v38 }
  0x9f   :  { %2018 = vmatprep.subr.bf16.mxu1 %v2017_v13  ;;  %v110_v9 = vshrl.u32 %v109_v8, 7  ;;  %v347_v42 = vld [vmem:[#allocation6 + $0x558] sm:$0xff]  ;;  %v348_v52 = vld [vmem:[#allocation6 + $0x560] sm:$0xff]  ;;  %v353_v53 = vld [vmem:[#allocation6 + $0x588] sm:$0xff] }
  0xa0   :  { %v351_v50 = vld [vmem:[#allocation6 + $0x578] sm:$0xff]  ;;  %v357_v54 = vld [vmem:[#allocation6 + $0x5a8] sm:$0xff]  ;;  %v1881_v55 = vpack.c.bf16 %v352_v43, %v347_v42  ;;  %v364_v59 = vld [vmem:[#allocation6 + $0x5e0] sm:$0xff]  ;;  %v2043_v62 = vpack.c.bf16 %v353_v53, %v348_v52 }
  0xa1   :  { %1860 = vmatpush1.bf16.msra.mxu0 %v1859_v20  ;;  %v2635_v10 = vsub.s32 0, %v110_v9  ;;  %v2637_v11 = vsub.s32 1, %v110_v9  ;;  %v2639_v12 = vsub.s32 2, %v110_v9  ;;  %v2641_v13 = vsub.s32 3, %v110_v9  ;;  %v359_v58 = vld [vmem:[#allocation6 + $0x5b8] sm:$0xff]  ;;  %v356_v63 = vld [vmem:[#allocation6 + $0x5a0] sm:$0xff] }
  0xa2   :  { %2020 = vmatpush1.bf16.msra.mxu1 %v2019_v21  ;;  %1862 = vmatprep.subr.bf16.mxu0 %v1861_v24  ;;  %v2643_v15 = vsub.s32 4, %v110_v9  ;;  %v361_v0 = vld [vmem:[#allocation6 + $0x5c8] sm:$0xff]  ;;  %v2045_v2 = vpack.c.bf16 %v364_v59, %v359_v58  ;;  %v358_v3 = vld [vmem:[#allocation6 + $0x5b0] sm:$0xff]  ;;  %v391_v43 = vld [vmem:[#allocation6 + $0x6b8] sm:$0xff] }
  0xa3   :  { %2022 = vmatprep.subr.bf16.mxu1 %v2021_v25  ;;  %v112_v17 = vrot.slane %v102_v14, %v2635_v10  ;;  %v116_v18 = vrot.slane %v102_v14, %v2637_v11  ;;  %v120_v19 = vrot.slane %v102_v14, %v2639_v12  ;;  %v124_v20 = vrot.slane %v102_v14, %v2641_v13  ;;  %v374_v8 = vld [vmem:[#allocation6 + $0x630] sm:$0xff]  ;;  %v389_v38 = vld [vmem:[#allocation6 + $0x6a8] sm:$0xff]  ;;  %v399_v52 = vld [vmem:[#allocation6 + $0x6f8] sm:$0xff] }
  0xa4   :  { %v128_v21 = vrot.slane %v102_v14, %v2643_v15  ;;  %v144_v22 = vrot.slane %v139_v16, %v2635_v10  ;;  %v148_v23 = vrot.slane %v139_v16, %v2637_v11  ;;  %v152_v24 = vrot.slane %v139_v16, %v2639_v12  ;;  %v394_v39 = vld [vmem:[#allocation6 + $0x6d0] sm:$0xff]  ;;  %v404_v53 = vld [vmem:[#allocation6 + $0x720] sm:$0xff] }
  0xa5   :  { %1864 = vmatpush1.bf16.msra.mxu0 %v1863_v32  ;;  %v156_v25 = vrot.slane %v139_v16, %v2641_v13  ;;  %v160_v26 = vrot.slane %v139_v16, %v2643_v15  ;;  %v1887_v9 = vpack.c.bf16 %v361_v0, %v356_v63  ;;  %v366_v16 = vld [vmem:[#allocation6 + $0x5f0] sm:$0xff]  ;;  %v2061_v59 = vpack.c.bf16 %v404_v53, %v399_v52  ;;  %v407_v63 = vld [vmem:[#allocation6 + $0x738] sm:$0xff]  ;;  %v412_v0 = vld [vmem:[#allocation6 + $0x760] sm:$0xff] }
  0xa6   :  { %2024 = vmatpush1.bf16.msra.mxu1 %v2023_v33  ;;  %1866 = vmatprep.subr.bf16.mxu0 %v1865_v36  ;;  %v386_v42 = vld [vmem:[#allocation6 + $0x690] sm:$0xff] }
  0xa7   :  { %2026 = vmatprep.subr.bf16.mxu1 %v2025_v37 }
  0xa9   :  { %1868 = vmatpush1.bf16.msra.mxu0 %v1867_v44  ;;  %v349_v44 = vld [vmem:[#allocation6 + $0x568] sm:$0xff] }
  0xaa   :  { %2028 = vmatpush1.bf16.msra.mxu1 %v2027_v45  ;;  %1870 = vmatprep.subr.bf16.mxu0 %v1869_v48  ;;  %v354_v45 = vld [vmem:[#allocation6 + $0x590] sm:$0xff]  ;;  %v2039_v48 = vpack.c.bf16 %v343_v41, %v338_v40 }
  0xab   :  { %2030 = vmatprep.subr.bf16.mxu1 %v2029_v49  ;;  %v346_v49 = vld [vmem:[#allocation6 + $0x550] sm:$0xff] }
  0xad   :  { %1872 = vmatpush1.bf16.msra.mxu0 %v1871_v56  ;;  %v2041_v56 = vpack.c.bf16 %v354_v45, %v349_v44  ;;  %v2057_v45 = vpack.c.bf16 %v394_v39, %v389_v38 }
  0xae   :  { %2032 = vmatpush1.bf16.msra.mxu1 %v2031_v57  ;;  %1874 = vmatprep.subr.bf16.mxu0 %v1873_v60  ;;  %v362_v57 = vld [vmem:[#allocation6 + $0x5d0] sm:$0xff] }
  0xaf   :  { %2034 = vmatprep.subr.bf16.mxu1 %v2033_v61  ;;  %v1883_v61 = vpack.c.bf16 %v351_v50, %v346_v49  ;;  %v1885_v1 = vpack.c.bf16 %v362_v57, %v357_v54  ;;  %v397_v49 = vld [vmem:[#allocation6 + $0x6e8] sm:$0xff]  ;;  %v402_v50 = vld [vmem:[#allocation6 + $0x710] sm:$0xff]  ;;  %v1899_v54 = vpack.c.bf16 %v391_v43, %v386_v42 }
  0xb0   :  { %v401_v57 = vld [vmem:[#allocation6 + $0x708] sm:$0xff]  ;;  %v1901_v58 = vpack.c.bf16 %v402_v50, %v397_v49  ;;  %v442_v43 = vld [vmem:[#allocation6 + $0x850] sm:$0xff]  ;;  %v436_v49 = vld [vmem:[#allocation6 + $0x820] sm:$0xff] }
  0xb1   :  { %1876 = vmatpush1.bf16.msra.mxu0 %v1875_v4  ;;  %v363_v4 = vld [vmem:[#allocation6 + $0x5d8] sm:$0xff]  ;;  %v437_v42 = vld [vmem:[#allocation6 + $0x828] sm:$0xff] }
  0xb2   :  { %2036 = vmatpush1.bf16.msra.mxu1 %v2035_v5  ;;  %1878 = vmatprep.subr.bf16.mxu0 %v1877_v6  ;;  %v367_v5 = vld [vmem:[#allocation6 + $0x5f8] sm:$0xff]  ;;  %v372_v6 = vld [vmem:[#allocation6 + $0x620] sm:$0xff]  ;;  %v2047_v14 = vpack.c.bf16 %v363_v4, %v358_v3  ;;  %v441_v50 = vld [vmem:[#allocation6 + $0x848] sm:$0xff]  ;;  %v1917_v52 = vpack.c.bf16 %v442_v43, %v437_v42 }
  0xb3   :  { %2038 = vmatprep.subr.bf16.mxu1 %v2037_v7  ;;  %v369_v7 = vld [vmem:[#allocation6 + $0x608] sm:$0xff]  ;;  %v476_v42 = vld [vmem:[#allocation6 + $0x960] sm:$0xff] }
  0xb4   :  { %v481_v43 = vld [vmem:[#allocation6 + $0x988] sm:$0xff] }
  0xf1   :  { %v106_v27 = vpop.permute.xlu0 %105 }
  0xf2   :  { %v134_v28 = vmul.f32 %v112_v17, %v106_v27  ;;  %v135_v29 = vmul.f32 %v116_v18, %v106_v27  ;;  %v136_v30 = vmul.f32 %v120_v19, %v106_v27  ;;  %v137_v31 = vmul.f32 %v124_v20, %v106_v27  ;;  %v371_v17 = vld [vmem:[#allocation6 + $0x618] sm:$0xff]  ;;  %v368_v20 = vld [vmem:[#allocation6 + $0x600] sm:$0xff] }
  0xf3   :  { %v138_v32 = vmul.f32 %v128_v21, %v106_v27  ;;  %v1889_v18 = vpack.c.bf16 %v372_v6, %v367_v5  ;;  %v2049_v19 = vpack.c.bf16 %v374_v8, %v369_v7  ;;  %v373_v21 = vld [vmem:[#allocation6 + $0x628] sm:$0xff]  ;;  %v406_v5 = vld [vmem:[#allocation6 + $0x730] sm:$0xff]  ;;  %v411_v6 = vld [vmem:[#allocation6 + $0x758] sm:$0xff]  ;;  %v1905_v7 = vpack.c.bf16 %v412_v0, %v407_v63 }
  0xf4   :  { %v166_v33 = vadd.f32 %v144_v22, %v134_v28  ;;  %v167_v34 = vadd.f32 %v148_v23, %v135_v29  ;;  %v2655_v35 = vadd.f32 %v152_v24, %v136_v30  ;;  %v169_v37 = vadd.f32 %v156_v25, %v137_v31  ;;  %v377_v22 = vld [vmem:[#allocation6 + $0x648] sm:$0xff]  ;;  %v382_v23 = vld [vmem:[#allocation6 + $0x670] sm:$0xff]  ;;  %v379_v24 = vld [vmem:[#allocation6 + $0x658] sm:$0xff] }
  0xf5   :  { %v2657_v36 = vadd.f32 %v160_v26, %v138_v32  ;;  %v384_v25 = vld [vmem:[#allocation6 + $0x680] sm:$0xff]  ;;  %v1891_v26 = vpack.c.bf16 %v371_v17, %v366_v16  ;;  %v2051_v27 = vpack.c.bf16 %v373_v21, %v368_v20  ;;  %v381_v29 = vld [vmem:[#allocation6 + $0x668] sm:$0xff]  ;;  %v1893_v30 = vpack.c.bf16 %v382_v23, %v377_v22  ;;  %v378_v32 = vld [vmem:[#allocation6 + $0x650] sm:$0xff] }
  0xf6   :  { %2334 = vtanh.f32 %v166_v33  ;;  %v376_v28 = vld [vmem:[#allocation6 + $0x640] sm:$0xff]  ;;  %v2053_v31 = vpack.c.bf16 %v384_v25, %v379_v24  ;;  %v383_v33 = vld [vmem:[#allocation6 + $0x678] sm:$0xff]  ;;  %v417_v16 = vld [vmem:[#allocation6 + $0x788] sm:$0xff]  ;;  %v1907_v20 = vpack.c.bf16 %v411_v6, %v406_v5 }
  0xf7   :  { %2336 = vtanh.f32 %v167_v34  ;;  %v387_v34 = vld [vmem:[#allocation6 + $0x698] sm:$0xff]  ;;  %v1895_v40 = vpack.c.bf16 %v381_v29, %v376_v28  ;;  %v2055_v41 = vpack.c.bf16 %v383_v33, %v378_v32  ;;  %v422_v17 = vld [vmem:[#allocation6 + $0x7b0] sm:$0xff]  ;;  %v416_v22 = vld [vmem:[#allocation6 + $0x780] sm:$0xff] }
  0xf8   :  { %2338 = vtanh.f32 %v169_v37  ;;  %v392_v37 = vld [vmem:[#allocation6 + $0x6c0] sm:$0xff]  ;;  %v421_v23 = vld [vmem:[#allocation6 + $0x7a8] sm:$0xff]  ;;  %v1909_v24 = vpack.c.bf16 %v422_v17, %v417_v16  ;;  %v427_v28 = vld [vmem:[#allocation6 + $0x7d8] sm:$0xff] }
  0xf9   :  { %v1897_v44 = vpack.c.bf16 %v392_v37, %v387_v34  ;;  %v432_v29 = vld [vmem:[#allocation6 + $0x800] sm:$0xff]  ;;  %v1911_v32 = vpack.c.bf16 %v421_v23, %v416_v22  ;;  %v426_v34 = vld [vmem:[#allocation6 + $0x7d0] sm:$0xff]  ;;  %v431_v37 = vld [vmem:[#allocation6 + $0x7f8] sm:$0xff]  ;;  %2340 = vtanh.f32 %v2655_v35 }
  0xfa   :  { %v1913_v38 = vpack.c.bf16 %v432_v29, %v427_v28  ;;  %v446_v63 = vld [vmem:[#allocation6 + $0x870] sm:$0xff]  ;;  %v451_v0 = vld [vmem:[#allocation6 + $0x898] sm:$0xff]  ;;  %v457_v5 = vld [vmem:[#allocation6 + $0x8c8] sm:$0xff]  ;;  %2342 = vtanh.f32 %v2657_v36 }
  0xfb   :  { %v462_v6 = vld [vmem:[#allocation6 + $0x8f0] sm:$0xff]  ;;  %v456_v16 = vld [vmem:[#allocation6 + $0x8c0] sm:$0xff]  ;;  %v461_v17 = vld [vmem:[#allocation6 + $0x8e8] sm:$0xff] }
  0xfc   :  { %v467_v22 = vld [vmem:[#allocation6 + $0x918] sm:$0xff]  ;;  %v472_v23 = vld [vmem:[#allocation6 + $0x940] sm:$0xff]  ;;  %v466_v28 = vld [vmem:[#allocation6 + $0x910] sm:$0xff] }
  0xfd   :  { %v471_v29 = vld [vmem:[#allocation6 + $0x938] sm:$0xff] }
 0x100   :  { %v2659_v46 = vpop.eup %2334 }
 0x101   :  { %v2661_v51 = vpop.eup %2336 }
 0x102   :  { %667 = vmatprep.mubr.f32.mxu0 %v2661_v51  ;;  %880 = vmatprep.mubr.f32.mxu1 %v2661_v51  ;;  %v2667_v60 = vpop.eup %2338 }
 0x103   :  { %668 = vmatmul.mubr.f32.vlgmr.msra.gmra.mrb[0].mxu0 %v2659_v46  ;;  %881 = vmatmul.mubr.f32.vlgmr.msra.gmra.mrb[0].mxu1 %v2659_v46 }
 0x104   :  { %1880 = vmatpush1.bf16.msra.mxu0 %v1879_v47  ;;  %2040 = vmatpush1.bf16.msra.mxu1 %v2039_v48  ;;  %v388_v47 = vld [vmem:[#allocation6 + $0x6a0] sm:$0xff]  ;;  %v393_v48 = vld [vmem:[#allocation6 + $0x6c8] sm:$0xff] }
 0x105   :  { %738 = vmatprep.mubr.f32.mxu0 %v2667_v60  ;;  %951 = vmatprep.mubr.f32.mxu1 %v2667_v60 }
 0x106   :  { %1882 = vmatprep.subr.bf16.mxu0 %v1881_v55  ;;  %2042 = vmatprep.subr.bf16.mxu1 %v2041_v56  ;;  %v2059_v55 = vpack.c.bf16 %v393_v48, %v388_v47  ;;  %v396_v56 = vld [vmem:[#allocation6 + $0x6e0] sm:$0xff]  ;;  %v1915_v47 = vpack.c.bf16 %v431_v37, %v426_v34  ;;  %v477_v34 = vld [vmem:[#allocation6 + $0x968] sm:$0xff]  ;;  %v482_v37 = vld [vmem:[#allocation6 + $0x990] sm:$0xff] }
 0x107   :  { %v1903_v3 = vpack.c.bf16 %v401_v57, %v396_v56  ;;  %v447_v56 = vld [vmem:[#allocation6 + $0x878] sm:$0xff]  ;;  %v452_v57 = vld [vmem:[#allocation6 + $0x8a0] sm:$0xff] }
 0x108   :  { %1884 = vmatpush1.bf16.msra.mxu0 %v1883_v61  ;;  %2044 = vmatpush1.bf16.msra.mxu1 %v2043_v62  ;;  %v398_v61 = vld [vmem:[#allocation6 + $0x6f0] sm:$0xff]  ;;  %v403_v62 = vld [vmem:[#allocation6 + $0x718] sm:$0xff] }
 0x109   :  { %1886 = vmatprep.subr.bf16.mxu0 %v1885_v1  ;;  %2046 = vmatprep.subr.bf16.mxu1 %v2045_v2  ;;  %v409_v1 = vld [vmem:[#allocation6 + $0x748] sm:$0xff]  ;;  %v414_v2 = vld [vmem:[#allocation6 + $0x770] sm:$0xff]  ;;  %v2063_v4 = vpack.c.bf16 %v403_v62, %v398_v61  ;;  %v1919_v61 = vpack.c.bf16 %v441_v50, %v436_v49  ;;  %v487_v49 = vld [vmem:[#allocation6 + $0x9b8] sm:$0xff] }
 0x10a   :  { %v2065_v8 = vpack.c.bf16 %v414_v2, %v409_v1  ;;  %v1921_v1 = vpack.c.bf16 %v452_v57, %v447_v56  ;;  %v492_v50 = vld [vmem:[#allocation6 + $0x9e0] sm:$0xff]  ;;  %v486_v56 = vld [vmem:[#allocation6 + $0x9b0] sm:$0xff]  ;;  %v491_v57 = vld [vmem:[#allocation6 + $0x9d8] sm:$0xff] }
 0x10c   :  { %1888 = vmatpush1.bf16.msra.mxu0 %v1887_v9  ;;  %2048 = vmatpush1.bf16.msra.mxu1 %v2047_v14  ;;  %v408_v9 = vld [vmem:[#allocation6 + $0x740] sm:$0xff]  ;;  %v413_v14 = vld [vmem:[#allocation6 + $0x768] sm:$0xff] }
 0x10d   :  { %1890 = vmatprep.subr.bf16.mxu0 %v1889_v18  ;;  %2050 = vmatprep.subr.bf16.mxu1 %v2049_v19  ;;  %v419_v18 = vld [vmem:[#allocation6 + $0x798] sm:$0xff]  ;;  %v424_v19 = vld [vmem:[#allocation6 + $0x7c0] sm:$0xff]  ;;  %v2067_v21 = vpack.c.bf16 %v413_v14, %v408_v9  ;;  %v1923_v9 = vpack.c.bf16 %v451_v0, %v446_v63  ;;  %v497_v63 = vld [vmem:[#allocation6 + $0xa08] sm:$0xff] }
 0x10e   :  { %v2069_v25 = vpack.c.bf16 %v424_v19, %v419_v18  ;;  %v1925_v18 = vpack.c.bf16 %v462_v6, %v457_v5  ;;  %v502_v0 = vld [vmem:[#allocation6 + $0xa30] sm:$0xff]  ;;  %v501_v5 = vld [vmem:[#allocation6 + $0xa28] sm:$0xff] }
 0x10f   :  { %v1941_v6 = vpack.c.bf16 %v502_v0, %v497_v63  ;;  %v536_v0 = vld [vmem:[#allocation6 + $0xb40] sm:$0xff] }
 0x110   :  { %1892 = vmatpush1.bf16.msra.mxu0 %v1891_v26  ;;  %2052 = vmatpush1.bf16.msra.mxu1 %v2051_v27  ;;  %v418_v26 = vld [vmem:[#allocation6 + $0x790] sm:$0xff]  ;;  %v423_v27 = vld [vmem:[#allocation6 + $0x7b8] sm:$0xff] }
 0x111   :  { %1894 = vmatprep.subr.bf16.mxu0 %v1893_v30  ;;  %2054 = vmatprep.subr.bf16.mxu1 %v2053_v31  ;;  %v429_v30 = vld [vmem:[#allocation6 + $0x7e8] sm:$0xff]  ;;  %v434_v31 = vld [vmem:[#allocation6 + $0x810] sm:$0xff]  ;;  %v2071_v33 = vpack.c.bf16 %v423_v27, %v418_v26  ;;  %v1927_v26 = vpack.c.bf16 %v461_v17, %v456_v16  ;;  %v512_v16 = vld [vmem:[#allocation6 + $0xa80] sm:$0xff] }
 0x112   :  { %v2073_v39 = vpack.c.bf16 %v434_v31, %v429_v30  ;;  %v1929_v30 = vpack.c.bf16 %v472_v23, %v467_v22  ;;  %v509_v17 = vld [vmem:[#allocation6 + $0xa68] sm:$0xff]  ;;  %v511_v22 = vld [vmem:[#allocation6 + $0xa78] sm:$0xff] }
 0x114   :  { %1896 = vmatpush1.bf16.msra.mxu0 %v1895_v40  ;;  %2056 = vmatpush1.bf16.msra.mxu1 %v2055_v41  ;;  %v428_v40 = vld [vmem:[#allocation6 + $0x7e0] sm:$0xff]  ;;  %v433_v41 = vld [vmem:[#allocation6 + $0x808] sm:$0xff] }
 0x115   :  { %1898 = vmatprep.subr.bf16.mxu0 %v1897_v44  ;;  %2058 = vmatprep.subr.bf16.mxu1 %v2057_v45  ;;  %v439_v44 = vld [vmem:[#allocation6 + $0x838] sm:$0xff]  ;;  %v444_v45 = vld [vmem:[#allocation6 + $0x860] sm:$0xff]  ;;  %v2075_v48 = vpack.c.bf16 %v433_v41, %v428_v40  ;;  %v1931_v40 = vpack.c.bf16 %v471_v29, %v466_v28  ;;  %v2672_v28 = vpop.eup %2340  ;;  %v522_v29 = vld [vmem:[#allocation6 + $0xad0] sm:$0xff] }
 0x116   :  { %v2077_v53 = vpack.c.bf16 %v444_v45, %v439_v44  ;;  %v1933_v44 = vpack.c.bf16 %v482_v37, %v477_v34  ;;  %v516_v34 = vld [vmem:[#allocation6 + $0xaa0] sm:$0xff]  ;;  %v521_v37 = vld [vmem:[#allocation6 + $0xac8] sm:$0xff] }
 0x118   :  { %1900 = vmatpush1.bf16.msra.mxu0 %v1899_v54  ;;  %2060 = vmatpush1.bf16.msra.mxu1 %v2059_v55  ;;  %v438_v54 = vld [vmem:[#allocation6 + $0x830] sm:$0xff]  ;;  %v443_v55 = vld [vmem:[#allocation6 + $0x858] sm:$0xff] }
 0x119   :  { %1902 = vmatprep.subr.bf16.mxu0 %v1901_v58  ;;  %2062 = vmatprep.subr.bf16.mxu1 %v2061_v59  ;;  %v449_v58 = vld [vmem:[#allocation6 + $0x888] sm:$0xff]  ;;  %v454_v59 = vld [vmem:[#allocation6 + $0x8b0] sm:$0xff]  ;;  %v2079_v62 = vpack.c.bf16 %v443_v55, %v438_v54  ;;  %v1935_v54 = vpack.c.bf16 %v481_v43, %v476_v42  ;;  %v527_v42 = vld [vmem:[#allocation6 + $0xaf8] sm:$0xff] }
 0x11a   :  { %v2081_v2 = vpack.c.bf16 %v454_v59, %v449_v58  ;;  %v1937_v58 = vpack.c.bf16 %v492_v50, %v487_v49  ;;  %v532_v43 = vld [vmem:[#allocation6 + $0xb20] sm:$0xff]  ;;  %v526_v50 = vld [vmem:[#allocation6 + $0xaf0] sm:$0xff] }
 0x11c   :  { %1904 = vmatpush1.bf16.msra.mxu0 %v1903_v3  ;;  %2064 = vmatpush1.bf16.msra.mxu1 %v2063_v4  ;;  %v448_v3 = vld [vmem:[#allocation6 + $0x880] sm:$0xff]  ;;  %v453_v4 = vld [vmem:[#allocation6 + $0x8a8] sm:$0xff] }
 0x11d   :  { %1906 = vmatprep.subr.bf16.mxu0 %v1905_v7  ;;  %2066 = vmatprep.subr.bf16.mxu1 %v2065_v8  ;;  %v459_v7 = vld [vmem:[#allocation6 + $0x8d8] sm:$0xff]  ;;  %v464_v8 = vld [vmem:[#allocation6 + $0x900] sm:$0xff]  ;;  %v2083_v14 = vpack.c.bf16 %v453_v4, %v448_v3  ;;  %v1939_v3 = vpack.c.bf16 %v491_v57, %v486_v56  ;;  %v533_v56 = vld [vmem:[#allocation6 + $0xb28] sm:$0xff] }
 0x11e   :  { %v2085_v19 = vpack.c.bf16 %v464_v8, %v459_v7  ;;  %v496_v4 = vld [vmem:[#allocation6 + $0xa00] sm:$0xff]  ;;  %v498_v8 = vld [vmem:[#allocation6 + $0xa10] sm:$0xff]  ;;  %v537_v57 = vld [vmem:[#allocation6 + $0xb48] sm:$0xff] }
 0x120   :  { %1908 = vmatpush1.bf16.msra.mxu0 %v1907_v20  ;;  %2068 = vmatpush1.bf16.msra.mxu1 %v2067_v21  ;;  %v458_v20 = vld [vmem:[#allocation6 + $0x8d0] sm:$0xff]  ;;  %v463_v21 = vld [vmem:[#allocation6 + $0x8f8] sm:$0xff] }
 0x121   :  { %1910 = vmatprep.subr.bf16.mxu0 %v1909_v24  ;;  %2070 = vmatprep.subr.bf16.mxu1 %v2069_v25  ;;  %v469_v24 = vld [vmem:[#allocation6 + $0x928] sm:$0xff]  ;;  %v474_v25 = vld [vmem:[#allocation6 + $0x950] sm:$0xff]  ;;  %v2087_v27 = vpack.c.bf16 %v463_v21, %v458_v20 }
 0x122   :  { %v2089_v31 = vpack.c.bf16 %v474_v25, %v469_v24  ;;  %v506_v21 = vld [vmem:[#allocation6 + $0xa50] sm:$0xff]  ;;  %v508_v25 = vld [vmem:[#allocation6 + $0xa60] sm:$0xff] }
 0x124   :  { %1912 = vmatpush1.bf16.msra.mxu0 %v1911_v32  ;;  %2072 = vmatpush1.bf16.msra.mxu1 %v2071_v33  ;;  %v468_v32 = vld [vmem:[#allocation6 + $0x920] sm:$0xff]  ;;  %v473_v33 = vld [vmem:[#allocation6 + $0x948] sm:$0xff] }
 0x125   :  { %1914 = vmatprep.subr.bf16.mxu0 %v1913_v38  ;;  %2074 = vmatprep.subr.bf16.mxu1 %v2073_v39  ;;  %v479_v38 = vld [vmem:[#allocation6 + $0x978] sm:$0xff]  ;;  %v484_v39 = vld [vmem:[#allocation6 + $0x9a0] sm:$0xff]  ;;  %v2091_v41 = vpack.c.bf16 %v473_v33, %v468_v32  ;;  %v1947_v32 = vpack.c.bf16 %v511_v22, %v506_v21  ;;  %v553_v21 = vld [vmem:[#allocation6 + $0xbc8] sm:$0xff] }
 0x126   :  { %v2093_v45 = vpack.c.bf16 %v484_v39, %v479_v38  ;;  %v557_v22 = vld [vmem:[#allocation6 + $0xbe8] sm:$0xff] }
 0x128   :  { %1916 = vmatpush1.bf16.msra.mxu0 %v1915_v47  ;;  %2076 = vmatpush1.bf16.msra.mxu1 %v2075_v48  ;;  %v478_v47 = vld [vmem:[#allocation6 + $0x970] sm:$0xff]  ;;  %v483_v48 = vld [vmem:[#allocation6 + $0x998] sm:$0xff] }
 0x129   :  { %1918 = vmatprep.subr.bf16.mxu0 %v1917_v52  ;;  %2078 = vmatprep.subr.bf16.mxu1 %v2077_v53  ;;  %v489_v52 = vld [vmem:[#allocation6 + $0x9c8] sm:$0xff]  ;;  %v494_v53 = vld [vmem:[#allocation6 + $0x9f0] sm:$0xff]  ;;  %v2095_v55 = vpack.c.bf16 %v483_v48, %v478_v47  ;;  %v2505_v47 = vmov 0.0   ;;  %v1951_v48 = vpack.c.bf16 %v521_v37, %v516_v34  ;;  %v563_v34 = vld [vmem:[#allocation6 + $0xc18] sm:$0xff] }
 0x12a   :  { %v2097_v59 = vpack.c.bf16 %v494_v53, %v489_v52  ;;  %v531_v52 = vld [vmem:[#allocation6 + $0xb18] sm:$0xff]  ;;  %v1953_v53 = vpack.c.bf16 %v532_v43, %v527_v42  ;;  %v566_v43 = vld [vmem:[#allocation6 + $0xc30] sm:$0xff] }
 0x12b   :  { %v567_v37 = vld [vmem:[#allocation6 + $0xc38] sm:$0xff] }
 0x12c   :  { %1920 = vmatpush1.bf16.msra.mxu0 %v1919_v61  ;;  %2080 = vmatpush1.bf16.msra.mxu1 %v2079_v62  ;;  %v488_v61 = vld [vmem:[#allocation6 + $0x9c0] sm:$0xff]  ;;  %v493_v62 = vld [vmem:[#allocation6 + $0x9e8] sm:$0xff] }
 0x12d   :  { %1922 = vmatprep.subr.bf16.mxu0 %v1921_v1  ;;  %2082 = vmatprep.subr.bf16.mxu1 %v2081_v2  ;;  %v499_v1 = vld [vmem:[#allocation6 + $0xa18] sm:$0xff]  ;;  %v504_v2 = vld [vmem:[#allocation6 + $0xa40] sm:$0xff]  ;;  %v2099_v35 = vpack.c.bf16 %v493_v62, %v488_v61  ;;  %v1955_v62 = vpack.c.bf16 %v531_v52, %v526_v50  ;;  %v573_v50 = vld [vmem:[#allocation6 + $0xc68] sm:$0xff] }
 0x12e   :  { %v2101_v7 = vpack.c.bf16 %v504_v2, %v499_v1  ;;  %v544_v61 = vld [vmem:[#allocation6 + $0xb80] sm:$0xff]  ;;  %v541_v1 = vld [vmem:[#allocation6 + $0xb68] sm:$0xff] }
 0x12f   :  { %v260_v52 = vld [vmem:[#allocation6 + $0x2a0] sm:$0xff] }
 0x130   :  { %1924 = vmatpush1.bf16.msra.mxu0 %v1923_v9  ;;  %2084 = vmatpush1.bf16.msra.mxu1 %v2083_v14  ;;  %v503_v9 = vld [vmem:[#allocation6 + $0xa38] sm:$0xff] }
 0x131   :  { %1926 = vmatprep.subr.bf16.mxu0 %v1925_v18  ;;  %2086 = vmatprep.subr.bf16.mxu1 %v2085_v19  ;;  %v507_v14 = vld [vmem:[#allocation6 + $0xa58] sm:$0xff]  ;;  %v514_v18 = vld [vmem:[#allocation6 + $0xa90] sm:$0xff]  ;;  %v1943_v19 = vpack.c.bf16 %v501_v5, %v496_v4  ;;  %v2103_v20 = vpack.c.bf16 %v503_v9, %v498_v8  ;;  %v1959_v9 = vpack.c.bf16 %v541_v1, %v536_v0 }
 0x132   :  { %v1945_v23 = vpack.c.bf16 %v512_v16, %v507_v14  ;;  %v2105_v24 = vpack.c.bf16 %v514_v18, %v509_v17  ;;  %v543_v4 = vld [vmem:[#allocation6 + $0xb78] sm:$0xff]  ;;  %v554_v8 = vld [vmem:[#allocation6 + $0xbd0] sm:$0xff] }
 0x133   :  { %v547_v5 = vld [vmem:[#allocation6 + $0xb98] sm:$0xff]  ;;  %v546_v16 = vld [vmem:[#allocation6 + $0xb90] sm:$0xff] }
 0x134   :  { %1928 = vmatpush1.bf16.msra.mxu0 %v1927_v26  ;;  %2088 = vmatpush1.bf16.msra.mxu1 %v2087_v27  ;;  %v513_v26 = vld [vmem:[#allocation6 + $0xa88] sm:$0xff]  ;;  %v551_v17 = vld [vmem:[#allocation6 + $0xbb8] sm:$0xff]  ;;  %v270_v0 = vld [vmem:[#allocation6 + $0x2f0] sm:$0xff] }
 0x135   :  { %1930 = vmatprep.subr.bf16.mxu0 %v1929_v30  ;;  %2090 = vmatprep.subr.bf16.mxu1 %v2089_v31  ;;  %v517_v27 = vld [vmem:[#allocation6 + $0xaa8] sm:$0xff]  ;;  %v519_v30 = vld [vmem:[#allocation6 + $0xab8] sm:$0xff]  ;;  %v524_v31 = vld [vmem:[#allocation6 + $0xae0] sm:$0xff]  ;;  %v2107_v33 = vpack.c.bf16 %v513_v26, %v508_v25  ;;  %v1963_v26 = vpack.c.bf16 %v551_v17, %v546_v16 }
 0x136   :  { %v1949_v38 = vpack.c.bf16 %v522_v29, %v517_v27  ;;  %v2109_v39 = vpack.c.bf16 %v524_v31, %v519_v30  ;;  %v564_v25 = vld [vmem:[#allocation6 + $0xc20] sm:$0xff]  ;;  %v561_v30 = vld [vmem:[#allocation6 + $0xc08] sm:$0xff]  ;;  %v275_v1 = vld [vmem:[#allocation6 + $0x318] sm:$0xff] }
 0x137   :  { %v556_v29 = vld [vmem:[#allocation6 + $0xbe0] sm:$0xff]  ;;  %v355_v16 = vld [vmem:[#allocation6 + $0x598] sm:$0xff] }
 0x138   :  { %1932 = vmatpush1.bf16.msra.mxu0 %v1931_v40  ;;  %2092 = vmatpush1.bf16.msra.mxu1 %v2091_v41  ;;  %v518_v40 = vld [vmem:[#allocation6 + $0xab0] sm:$0xff]  ;;  %v523_v41 = vld [vmem:[#allocation6 + $0xad8] sm:$0xff]  ;;  %v280_v17 = vld [vmem:[#allocation6 + $0x340] sm:$0xff] }
 0x139   :  { %1934 = vmatprep.subr.bf16.mxu0 %v1933_v44  ;;  %2094 = vmatprep.subr.bf16.mxu1 %v2093_v45  ;;  %v529_v44 = vld [vmem:[#allocation6 + $0xb08] sm:$0xff]  ;;  %v534_v45 = vld [vmem:[#allocation6 + $0xb30] sm:$0xff]  ;;  %v2111_v49 = vpack.c.bf16 %v523_v41, %v518_v40  ;;  %v1967_v41 = vpack.c.bf16 %v561_v30, %v556_v29 }
 0x13a   :  { %v574_v40 = vld [vmem:[#allocation6 + $0xc70] sm:$0xff]  ;;  %v365_v29 = vld [vmem:[#allocation6 + $0x5e8] sm:$0xff] }
 0x13b   :  { %v290_v30 = vld [vmem:[#allocation6 + $0x390] sm:$0xff] }
 0x13c   :  { %1936 = vmatpush1.bf16.msra.mxu0 %v1935_v54  ;;  %2096 = vmatpush1.bf16.msra.mxu1 %v2095_v55  ;;  %v2113_v54 = vpack.c.bf16 %v534_v45, %v529_v44  ;;  %v528_v55 = vld [vmem:[#allocation6 + $0xb00] sm:$0xff]  ;;  %v571_v44 = vld [vmem:[#allocation6 + $0xc58] sm:$0xff] }
 0x13d   :  { %1938 = vmatprep.subr.bf16.mxu0 %v1937_v58  ;;  %2098 = vmatprep.subr.bf16.mxu1 %v2097_v59  ;;  %v542_v58 = vld [vmem:[#allocation6 + $0xb70] sm:$0xff]  ;;  %v539_v59 = vld [vmem:[#allocation6 + $0xb58] sm:$0xff]  ;;  %v2115_v63 = vpack.c.bf16 %v533_v56, %v528_v55  ;;  %v425_v55 = vld [vmem:[#allocation6 + $0x7c8] sm:$0xff]  ;;  %v1971_v56 = vpack.c.bf16 %v571_v44, %v566_v43 }
 0x13e   :  { %v1957_v2 = vpack.c.bf16 %v542_v58, %v537_v57  ;;  %v305_v43 = vld [vmem:[#allocation6 + $0x408] sm:$0xff]  ;;  %v460_v44 = vld [vmem:[#allocation6 + $0x8e0] sm:$0xff] }
 0x140   :  { %1940 = vmatpush1.bf16.msra.mxu0 %v1939_v3  ;;  %2100 = vmatpush1.bf16.msra.mxu1 %v2099_v35  ;;  %v2117_v3 = vpack.c.bf16 %v544_v61, %v539_v59  ;;  %v538_v35 = vld [vmem:[#allocation6 + $0xb50] sm:$0xff]  ;;  %v180_v59 = vld [vmem:[#allocation6 + $0x20] sm:$0xff]  ;;  %v185_v61 = vld [vmem:[#allocation6 + $0x48] sm:$0xff] }
 0x141   :  { %1942 = vmatprep.subr.bf16.mxu0 %v1941_v6  ;;  %2102 = vmatprep.subr.bf16.mxu1 %v2101_v7  ;;  %v552_v6 = vld [vmem:[#allocation6 + $0xbc0] sm:$0xff]  ;;  %v549_v7 = vld [vmem:[#allocation6 + $0xba8] sm:$0xff]  ;;  %v2119_v14 = vpack.c.bf16 %v543_v4, %v538_v35  ;;  %v2135_v35 = vpack.c.bf16 %v185_v61, %v180_v59  ;;  %v475_v59 = vld [vmem:[#allocation6 + $0x958] sm:$0xff] }
 0x142   :  { %v1961_v18 = vpack.c.bf16 %v552_v6, %v547_v5  ;;  %v190_v5 = vld [vmem:[#allocation6 + $0x70] sm:$0xff]  ;;  %v195_v6 = vld [vmem:[#allocation6 + $0x98] sm:$0xff] }
 0x143   :  { %739 = vmatmul.mubr.f32.vlgmr.msra.gmra.mrb[0].mxu0 %v2672_v28  ;;  %952 = vmatmul.mubr.f32.vlgmr.msra.gmra.mrb[0].mxu1 %v2672_v28 }
 0x144   :  { %1944 = vmatpush1.bf16.msra.mxu0 %v1943_v19  ;;  %2104 = vmatpush1.bf16.msra.mxu1 %v2103_v20  ;;  %v2121_v19 = vpack.c.bf16 %v554_v8, %v549_v7  ;;  %v548_v20 = vld [vmem:[#allocation6 + $0xba0] sm:$0xff]  ;;  %v350_v7 = vld [vmem:[#allocation6 + $0x570] sm:$0xff]  ;;  %v2679_v8 = vpop.eup %2342 }
 0x145   :  { %1946 = vmatprep.subr.bf16.mxu0 %v1945_v23  ;;  %2106 = vmatprep.subr.bf16.mxu1 %v2105_v24  ;;  %v562_v23 = vld [vmem:[#allocation6 + $0xc10] sm:$0xff]  ;;  %v559_v24 = vld [vmem:[#allocation6 + $0xbf8] sm:$0xff]  ;;  %v2123_v27 = vpack.c.bf16 %v553_v21, %v548_v20  ;;  %v445_v20 = vld [vmem:[#allocation6 + $0x868] sm:$0xff]  ;;  %v2139_v21 = vpack.c.bf16 %v195_v6, %v190_v5 }
 0x146   :  { %809 = vmatprep.mubr.f32.mxu0 %v2505_v47  ;;  %1022 = vmatprep.mubr.f32.mxu1 %v2505_v47  ;;  %v1965_v31 = vpack.c.bf16 %v562_v23, %v557_v22  ;;  %v2171_v22 = vpack.c.bf16 %v355_v16, %v350_v7  ;;  %v325_v5 = vld [vmem:[#allocation6 + $0x4a8] sm:$0xff]  ;;  %v480_v6 = vld [vmem:[#allocation6 + $0x980] sm:$0xff] }
 0x147   :  { %v485_v7 = vld [vmem:[#allocation6 + $0x9a8] sm:$0xff] }
 0x148   :  { %1948 = vmatpush1.bf16.msra.mxu0 %v1947_v32  ;;  %2108 = vmatpush1.bf16.msra.mxu1 %v2107_v33  ;;  %v2125_v32 = vpack.c.bf16 %v564_v25, %v559_v24  ;;  %v558_v33 = vld [vmem:[#allocation6 + $0xbf0] sm:$0xff]  ;;  %v200_v24 = vld [vmem:[#allocation6 + $0xc0] sm:$0xff]  ;;  %v205_v25 = vld [vmem:[#allocation6 + $0xe8] sm:$0xff] }
 0x149   :  { %1950 = vmatprep.subr.bf16.mxu0 %v1949_v38  ;;  %2110 = vmatprep.subr.bf16.mxu1 %v2109_v39  ;;  %v572_v38 = vld [vmem:[#allocation6 + $0xc60] sm:$0xff]  ;;  %v569_v39 = vld [vmem:[#allocation6 + $0xc48] sm:$0xff]  ;;  %v2127_v42 = vpack.c.bf16 %v563_v34, %v558_v33  ;;  %v455_v33 = vld [vmem:[#allocation6 + $0x8b8] sm:$0xff]  ;;  %v2143_v34 = vpack.c.bf16 %v205_v25, %v200_v24 }
 0x14a   :  { %v1969_v45 = vpack.c.bf16 %v572_v38, %v567_v37  ;;  %v215_v38 = vld [vmem:[#allocation6 + $0x138] sm:$0xff]  ;;  %v490_v24 = vld [vmem:[#allocation6 + $0x9d0] sm:$0xff] }
 0x14b   :  { %v495_v25 = vld [vmem:[#allocation6 + $0x9f8] sm:$0xff] }
 0x14c   :  { %1952 = vmatpush1.bf16.msra.mxu0 %v1951_v48  ;;  %2112 = vmatpush1.bf16.msra.mxu1 %v2111_v49  ;;  %v2129_v48 = vpack.c.bf16 %v574_v40, %v569_v39  ;;  %v568_v49 = vld [vmem:[#allocation6 + $0xc40] sm:$0xff]  ;;  %v370_v39 = vld [vmem:[#allocation6 + $0x610] sm:$0xff] }
 0x14d   :  { %1954 = vmatprep.subr.bf16.mxu0 %v1953_v53  ;;  %2114 = vmatprep.subr.bf16.mxu1 %v2113_v54  ;;  %v265_v53 = vld [vmem:[#allocation6 + $0x2c8] sm:$0xff]  ;;  %v420_v54 = vld [vmem:[#allocation6 + $0x7a0] sm:$0xff]  ;;  %v2131_v36 = vpack.c.bf16 %v573_v50, %v568_v49 }
 0x14e   :  { %v2133_v57 = vpack.c.bf16 %v265_v53, %v260_v52  ;;  %v2165_v58 = vpack.c.bf16 %v425_v55, %v420_v54  ;;  %v220_v52 = vld [vmem:[#allocation6 + $0x160] sm:$0xff]  ;;  %v225_v53 = vld [vmem:[#allocation6 + $0x188] sm:$0xff] }
 0x14f   :  { %v380_v54 = vld [vmem:[#allocation6 + $0x660] sm:$0xff]  ;;  %v2151_v61 = vpack.c.bf16 %v225_v53, %v220_v52  ;;  %v515_v52 = vld [vmem:[#allocation6 + $0xa98] sm:$0xff] }
 0x150   :  { %1956 = vmatpush1.bf16.msra.mxu0 %v1955_v62  ;;  %2116 = vmatpush1.bf16.msra.mxu1 %v2115_v63  ;;  %v340_v62 = vld [vmem:[#allocation6 + $0x520] sm:$0xff]  ;;  %v345_v63 = vld [vmem:[#allocation6 + $0x548] sm:$0xff] }
 0x151   :  { %1958 = vmatprep.subr.bf16.mxu0 %v1957_v2  ;;  %2118 = vmatprep.subr.bf16.mxu1 %v2117_v3  ;;  %v430_v2 = vld [vmem:[#allocation6 + $0x7f0] sm:$0xff]  ;;  %v435_v3 = vld [vmem:[#allocation6 + $0x818] sm:$0xff]  ;;  %v2167_v4 = vpack.c.bf16 %v345_v63, %v340_v62 }
 0x154   :  { %1960 = vmatpush1.bf16.msra.mxu0 %v1959_v9  ;;  %2120 = vmatpush1.bf16.msra.mxu1 %v2119_v14  ;;  %v2137_v9 = vpack.c.bf16 %v275_v1, %v270_v0  ;;  %v2169_v14 = vpack.c.bf16 %v435_v3, %v430_v2  ;;  %v230_v0 = vld [vmem:[#allocation6 + $0x1b0] sm:$0xff]  ;;  %v235_v1 = vld [vmem:[#allocation6 + $0x1d8] sm:$0xff] }
 0x155   :  { %1962 = vmatprep.subr.bf16.mxu0 %v1961_v18  ;;  %2122 = vmatprep.subr.bf16.mxu1 %v2121_v19  ;;  %v285_v18 = vld [vmem:[#allocation6 + $0x368] sm:$0xff]  ;;  %v440_v19 = vld [vmem:[#allocation6 + $0x840] sm:$0xff]  ;;  %v390_v2 = vld [vmem:[#allocation6 + $0x6b0] sm:$0xff] }
 0x156   :  { %v2141_v23 = vpack.c.bf16 %v285_v18, %v280_v17  ;;  %v240_v17 = vld [vmem:[#allocation6 + $0x200] sm:$0xff]  ;;  %v245_v18 = vld [vmem:[#allocation6 + $0x228] sm:$0xff] }
 0x158   :  { %1964 = vmatpush1.bf16.msra.mxu0 %v1963_v26  ;;  %2124 = vmatpush1.bf16.msra.mxu1 %v2123_v27  ;;  %v360_v26 = vld [vmem:[#allocation6 + $0x5c0] sm:$0xff]  ;;  %v2173_v27 = vpack.c.bf16 %v445_v20, %v440_v19  ;;  %v2189_v20 = vpack.c.bf16 %v485_v7, %v480_v6  ;;  %v1251_v7 = vld [vmem:[%s2968_s5 + $0x38] sm:$0xff] }
 0x159   :  { %1966 = vmatprep.subr.bf16.mxu0 %v1965_v31  ;;  %2126 = vmatprep.subr.bf16.mxu1 %v2125_v32  ;;  %v295_v31 = vld [vmem:[#allocation6 + $0x3b8] sm:$0xff]  ;;  %v450_v32 = vld [vmem:[#allocation6 + $0x890] sm:$0xff]  ;;  %v400_v19 = vld [vmem:[#allocation6 + $0x700] sm:$0xff] }
 0x15a   :  { %v2145_v37 = vpack.c.bf16 %v295_v31, %v290_v30  ;;  %v2177_v40 = vpack.c.bf16 %v455_v33, %v450_v32  ;;  %v250_v30 = vld [vmem:[#allocation6 + $0x250] sm:$0xff]  ;;  %v255_v31 = vld [vmem:[#allocation6 + $0x278] sm:$0xff]  ;;  %v2193_v32 = vpack.c.bf16 %v495_v25, %v490_v24  ;;  %v1250_v6 = vld [vmem:[%s2968_s5 + $0x30] sm:$0xff] }
 0x15b   :  { %v410_v33 = vld [vmem:[#allocation6 + $0x750] sm:$0xff] }
 0x15c   :  { %1968 = vmatpush1.bf16.msra.mxu0 %v1967_v41  ;;  %2128 = vmatpush1.bf16.msra.mxu1 %v2127_v42  ;;  %v375_v41 = vld [vmem:[#allocation6 + $0x638] sm:$0xff]  ;;  %v300_v42 = vld [vmem:[#allocation6 + $0x3e0] sm:$0xff]  ;;  %v570_v25 = vld [vmem:[#allocation6 + $0xc50] sm:$0xff] }
 0x15d   :  { %1970 = vmatprep.subr.bf16.mxu0 %v1969_v45  ;;  %2130 = vmatprep.subr.bf16.mxu1 %v2129_v48  ;;  %v465_v45 = vld [vmem:[#allocation6 + $0x908] sm:$0xff]  ;;  %v2179_v49 = vpack.c.bf16 %v375_v41, %v370_v39  ;;  %v2149_v50 = vpack.c.bf16 %v305_v43, %v300_v42  ;;  %v500_v39 = vld [vmem:[#allocation6 + $0xa20] sm:$0xff]  ;;  %v1244_v42 = vld [vmem:[%s2968_s5] sm:$0xff] }
 0x15e   :  { %v2181_v55 = vpack.c.bf16 %v465_v45, %v460_v44  ;;  %v1245_v43 = vld [vmem:[%s2968_s5 + $0x8] sm:$0xff]  ;;  %v1262_v45 = vld [vmem:[%s2968_s5 + $0x90] sm:$0xff] }
 0x15f   :  { %v2223_v53 = vpack.c.bf16 %v1245_v43, %v1244_v42 }
 0x160   :  { %1972 = vmatpush1.bf16.msra.mxu0 %v1971_v56  ;;  %2132 = vmatpush1.bf16.msra.mxu1 %v2131_v36  ;;  %v385_v56 = vld [vmem:[#allocation6 + $0x688] sm:$0xff]  ;;  %v310_v36 = vld [vmem:[#allocation6 + $0x430] sm:$0xff] }
 0x161   :  { %2134 = vmatprep.subr.bf16.mxu0 %v2133_v57  ;;  %2166 = vmatprep.subr.bf16.mxu1 %v2165_v58  ;;  %v315_v57 = vld [vmem:[#allocation6 + $0x458] sm:$0xff]  ;;  %v470_v58 = vld [vmem:[#allocation6 + $0x930] sm:$0xff]  ;;  %v2183_v62 = vpack.c.bf16 %v385_v56, %v380_v54 }
 0x162   :  { %v2153_v63 = vpack.c.bf16 %v315_v57, %v310_v36  ;;  %v2185_v3 = vpack.c.bf16 %v475_v59, %v470_v58  ;;  %v1247_v56 = vld [vmem:[%s2968_s5 + $0x18] sm:$0xff]  ;;  %v1264_v57 = vld [vmem:[%s2968_s5 + $0xa0] sm:$0xff]  ;;  %v520_v58 = vld [vmem:[#allocation6 + $0xac0] sm:$0xff] }
 0x163   :  { %810 = vmatmul.mubr.f32.vlgmr.msra.gmra.mrb[0].mxu0 %v2679_v8  ;;  %1023 = vmatmul.mubr.f32.vlgmr.msra.gmra.mrb[0].mxu1 %v2679_v8  ;;  %v525_v59 = vld [vmem:[#allocation6 + $0xae8] sm:$0xff] }
 0x164   :  { %2136 = vmatpush3.bf16.msra.mxu0 %v2135_v35  ;;  %1093 = vmatprep.mubr.f32.mxu0 %v2661_v51  ;;  %v2175_v51 = vpack.c.bf16 %v365_v29, %v360_v26  ;;  %v395_v35 = vld [vmem:[#allocation6 + $0x6d8] sm:$0xff]  ;;  %v2159_v26 = vpack.c.bf16 %v245_v18, %v240_v17  ;;  %v2235_v17 = vpack.c.bf16 %v1251_v7, %v1250_v6  ;;  %v1254_v6 = vld [vmem:[%s2968_s5 + $0x50] sm:$0xff]  ;;  %v1255_v7 = vld [vmem:[%s2968_s5 + $0x58] sm:$0xff] }
 0x165   :  { %2168 = vmatpush3.bf16.msra.mxu1 %v2167_v4  ;;  %1163 = vmatprep.mubr.f32.mxu1 %v2667_v60  ;;  %v210_v60 = vld [vmem:[#allocation6 + $0x110] sm:$0xff]  ;;  %v320_v4 = vld [vmem:[#allocation6 + $0x480] sm:$0xff] }
 0x166   :  { %2138 = vmatprep.subr.bf16.mxu0 %v2137_v9  ;;  %2170 = vmatprep.subr.bf16.mxu1 %v2169_v14  ;;  %v2147_v48 = vpack.c.bf16 %v215_v38, %v210_v60  ;;  %v2155_v9 = vpack.c.bf16 %v235_v1, %v230_v0  ;;  %v2187_v14 = vpack.c.bf16 %v395_v35, %v390_v2  ;;  %v1266_v1 = vld [vmem:[%s2968_s5 + $0xb0] sm:$0xff]  ;;  %v1267_v2 = vld [vmem:[%s2968_s5 + $0xb8] sm:$0xff]  ;;  %v535_v35 = vld [vmem:[#allocation6 + $0xb38] sm:$0xff] }
 0x167   :  { %v2157_v16 = vpack.c.bf16 %v325_v5, %v320_v4  ;;  %v2163_v60 = vpack.c.bf16 %v255_v31, %v250_v30  ;;  %v2204_v0 = vpack.c.bf16 %v525_v59, %v520_v58  ;;  %v2233_v5 = vpack.c.bf16 %v1267_v2, %v1266_v1  ;;  %v1301_v58 = vld [vmem:[%s2968_s5 + $0x1c8] sm:$0xff]  ;;  %v1252_v59 = vld [vmem:[%s2968_s5 + $0x40] sm:$0xff]  ;;  %v1270_v2 = vld [vmem:[%s2968_s5 + $0xd0] sm:$0xff] }
 0x168   :  { %2140 = vmatpush3.bf16.msra.mxu0 %v2139_v21  ;;  %v405_v21 = vld [vmem:[#allocation6 + $0x728] sm:$0xff] }
 0x169   :  { %2172 = vmatpush3.bf16.msra.mxu1 %v2171_v22  ;;  %2142 = vmatprep.subr.bf16.mxu0 %v2141_v23  ;;  %v330_v22 = vld [vmem:[#allocation6 + $0x4d0] sm:$0xff]  ;;  %v335_v23 = vld [vmem:[#allocation6 + $0x4f8] sm:$0xff] }
 0x16a   :  { %2174 = vmatprep.subr.bf16.mxu1 %v2173_v27  ;;  %v2191_v27 = vpack.c.bf16 %v405_v21, %v400_v19  ;;  %v2161_v29 = vpack.c.bf16 %v335_v23, %v330_v22  ;;  %v550_v19 = vld [vmem:[#allocation6 + $0xbb0] sm:$0xff]  ;;  %v560_v22 = vld [vmem:[#allocation6 + $0xc00] sm:$0xff]  ;;  %v565_v23 = vld [vmem:[#allocation6 + $0xc28] sm:$0xff] }
 0x16b   :  { %v2216_v24 = vpack.c.bf16 %v565_v23, %v560_v22  ;;  %v1305_v23 = vld [vmem:[%s2968_s5 + $0x1e8] sm:$0xff] }
 0x16c   :  { %2144 = vmatpush3.bf16.msra.mxu0 %v2143_v34  ;;  %v415_v34 = vld [vmem:[#allocation6 + $0x778] sm:$0xff] }
 0x16d   :  { %2176 = vmatpush3.bf16.msra.mxu1 %v2175_v51  ;;  %2146 = vmatprep.subr.bf16.mxu0 %v2145_v37  ;;  %v1260_v51 = vld [vmem:[%s2968_s5 + $0x80] sm:$0xff]  ;;  %v1261_v37 = vld [vmem:[%s2968_s5 + $0x88] sm:$0xff]  ;;  %v2195_v38 = vpack.c.bf16 %v415_v34, %v410_v33  ;;  %v1294_v34 = vld [vmem:[%s2968_s5 + $0x190] sm:$0xff] }
 0x16e   :  { %2178 = vmatprep.subr.bf16.mxu1 %v2177_v40  ;;  %v505_v40 = vld [vmem:[#allocation6 + $0xa48] sm:$0xff]  ;;  %v2221_v41 = vpack.c.bf16 %v1261_v37, %v1260_v51  ;;  %v1277_v33 = vld [vmem:[%s2968_s5 + $0x108] sm:$0xff] }
 0x16f   :  { %v2198_v44 = vpack.c.bf16 %v505_v40, %v500_v39  ;;  %v1295_v51 = vld [vmem:[%s2968_s5 + $0x198] sm:$0xff]  ;;  %v1296_v40 = vld [vmem:[%s2968_s5 + $0x1a0] sm:$0xff] }
 0x170   :  { %2148 = vmatpush3.bf16.msra.mxu0 %v2147_v48  ;;  %v1263_v48 = vld [vmem:[%s2968_s5 + $0x98] sm:$0xff] }
 0x171   :  { %2180 = vmatpush3.bf16.msra.mxu1 %v2179_v49  ;;  %2150 = vmatprep.subr.bf16.mxu0 %v2149_v50  ;;  %v2506_v49 = vmov 0.0|0.0   ;;  %v510_v50 = vld [vmem:[#allocation6 + $0xa70] sm:$0xff]  ;;  %v2225_v54 = vpack.c.bf16 %v1263_v48, %v1262_v45  ;;  %v1281_v45 = vld [vmem:[%s2968_s5 + $0x128] sm:$0xff]  ;;  %v1298_v48 = vld [vmem:[%s2968_s5 + $0x1b0] sm:$0xff] }
 0x172   :  { %2182 = vmatprep.subr.bf16.mxu1 %v2181_v55  ;;  %v1246_v55 = vld [vmem:[%s2968_s5 + $0x10] sm:$0xff]  ;;  %v2201_v36 = vpack.c.bf16 %v515_v52, %v510_v50  ;;  %v1279_v39 = vld [vmem:[%s2968_s5 + $0x118] sm:$0xff] }
 0x174   :  { %2152 = vmatpush3.bf16.msra.mxu0 %v2151_v61 }
 0x175   :  { %2184 = vmatpush3.bf16.msra.mxu1 %v2183_v62  ;;  %2154 = vmatprep.subr.bf16.mxu0 %v2153_v63  ;;  %v1248_v62 = vld [vmem:[%s2968_s5 + $0x20] sm:$0xff]  ;;  %v1249_v63 = vld [vmem:[%s2968_s5 + $0x28] sm:$0xff] }
 0x176   :  { %2186 = vmatprep.subr.bf16.mxu1 %v2185_v3  ;;  %v530_v3 = vld [vmem:[#allocation6 + $0xb10] sm:$0xff]  ;;  %v2231_v4 = vpack.c.bf16 %v1249_v63, %v1248_v62 }
 0x177   :  { %v1284_v63 = vld [vmem:[%s2968_s5 + $0x140] sm:$0xff] }
 0x178   :  { %2156 = vmatpush3.bf16.msra.mxu0 %v2155_v9  ;;  %v2207_v9 = vpack.c.bf16 %v535_v35, %v530_v3  ;;  %v1271_v3 = vld [vmem:[%s2968_s5 + $0xd8] sm:$0xff]  ;;  %v1302_v35 = vld [vmem:[%s2968_s5 + $0x1d0] sm:$0xff] }
 0x179   :  { %2188 = vmatpush3.bf16.msra.mxu1 %v2187_v14  ;;  %2158 = vmatprep.subr.bf16.mxu0 %v2157_v16  ;;  %v540_v14 = vld [vmem:[#allocation6 + $0xb60] sm:$0xff]  ;;  %v545_v16 = vld [vmem:[#allocation6 + $0xb88] sm:$0xff] }
 0x17a   :  { %2190 = vmatprep.subr.bf16.mxu1 %v2189_v20  ;;  %v2210_v18 = vpack.c.bf16 %v545_v16, %v540_v14  ;;  %v555_v20 = vld [vmem:[#allocation6 + $0xbd8] sm:$0xff]  ;;  %v2243_v14 = vpack.c.bf16 %v1255_v7, %v1254_v6  ;;  %v1286_v16 = vld [vmem:[%s2968_s5 + $0x150] sm:$0xff] }
 0x17b   :  { %v2213_v21 = vpack.c.bf16 %v555_v20, %v550_v19  ;;  %v1272_v19 = vld [vmem:[%s2968_s5 + $0xe0] sm:$0xff]  ;;  %v1273_v20 = vld [vmem:[%s2968_s5 + $0xe8] sm:$0xff]  ;;  %v1318_v7 = vld [vmem:[%s2968_s5 + $0x250] sm:$0xff] }
 0x17c   :  { %2160 = vmatpush3.bf16.msra.mxu0 %v2159_v26  ;;  %v575_v26 = vld [vmem:[#allocation6 + $0xc78] sm:$0xff]  ;;  %v2245_v22 = vpack.c.bf16 %v1273_v20, %v1272_v19 }
 0x17d   :  { %2192 = vmatpush3.bf16.msra.mxu1 %v2191_v27  ;;  %2162 = vmatprep.subr.bf16.mxu0 %v2161_v29  ;;  %v1292_v27 = vld [vmem:[%s2968_s5 + $0x180] sm:$0xff]  ;;  %v1293_v29 = vld [vmem:[%s2968_s5 + $0x188] sm:$0xff]  ;;  %v2219_v30 = vpack.c.bf16 %v575_v26, %v570_v25 }
 0x17e   :  { %2194 = vmatprep.subr.bf16.mxu1 %v2193_v32  ;;  %v2253_v31 = vpack.c.bf16 %v1293_v29, %v1292_v27  ;;  %v1276_v32 = vld [vmem:[%s2968_s5 + $0x100] sm:$0xff]  ;;  %v1257_v25 = vld [vmem:[%s2968_s5 + $0x68] sm:$0xff] }
 0x17f   :  { %v2255_v37 = vpack.c.bf16 %v1277_v33, %v1276_v32  ;;  %v1288_v29 = vld [vmem:[%s2968_s5 + $0x160] sm:$0xff]  ;;  %v1275_v33 = vld [vmem:[%s2968_s5 + $0xf8] sm:$0xff] }
 0x180   :  { %2164 = vmatpush3.bf16.msra.mxu0 %v2163_v60  ;;  %v2257_v60 = vpack.c.bf16 %v1295_v51, %v1294_v34  ;;  %v1306_v34 = vld [vmem:[%s2968_s5 + $0x1f0] sm:$0xff]  ;;  %v1307_v51 = vld [vmem:[%s2968_s5 + $0x1f8] sm:$0xff] }
 0x181   :  { %2196 = vmatpush3.bf16.msra.mxu1 %v2195_v38  ;;  %2197 = vmatprep.subr.bf16.mxu0 %v2506_v49  ;;  %v1278_v38 = vld [vmem:[%s2968_s5 + $0x110] sm:$0xff] }
 0x182   :  { %2222 = vmatprep.subr.bf16.mxu1 %v2221_v41  ;;  %v1297_v41 = vld [vmem:[%s2968_s5 + $0x1a8] sm:$0xff]  ;;  %v2259_v42 = vpack.c.bf16 %v1279_v39, %v1278_v38  ;;  %v1258_v38 = vld [vmem:[%s2968_s5 + $0x70] sm:$0xff]  ;;  %v1259_v39 = vld [vmem:[%s2968_s5 + $0x78] sm:$0xff] }
 0x183   :  { %1094 = vmatmul.mubr.f32.vlgmr.msra.gmra.mrb[2].mxu0 %v2659_v46  ;;  %v1265_v46 = vld [vmem:[%s2968_s5 + $0xa8] sm:$0xff]  ;;  %v2261_v43 = vpack.c.bf16 %v1297_v41, %v1296_v40  ;;  %v1290_v40 = vld [vmem:[%s2968_s5 + $0x170] sm:$0xff]  ;;  %v2251_v41 = vpack.c.bf16 %v1259_v39, %v1258_v38 }
 0x184   :  { %1164 = vmatmul.mubr.f32.vlgmr.msra.gmra.mrb[2].mxu1 %v2672_v28  ;;  %2199 = vmatpush3.bf16.msra.mxu0 %v2198_v44  ;;  %v2227_v28 = vpack.c.bf16 %v1247_v56, %v1246_v55  ;;  %v2229_v61 = vpack.c.bf16 %v1265_v46, %v1264_v57  ;;  %v1280_v44 = vld [vmem:[%s2968_s5 + $0x120] sm:$0xff] }
 0x185   :  { %2200 = vmatprep.subr.bf16.mxu0 %v2506_v49  ;;  %1775 = vmatprep.mubr.msk.f32.mxu0 %vm2507_vm0, %v2505_v47  ;;  %v2263_v50 = vpack.c.bf16 %v1281_v45, %v1280_v44  ;;  %v1268_v56 = vld [vmem:[%s2968_s5 + $0xc0] sm:$0xff]  ;;  %v2891_v44 = vld [vmem:[#allocation7] sm:$0x1f] }
 0x186   :  { %2224 = vmatpush3.bf16.msra.mxu1 %v2223_v53  ;;  %v1282_v53 = vld [vmem:[%s2968_s5 + $0x130] sm:$0xff]  ;;  %v1300_v57 = vld [vmem:[%s2968_s5 + $0x1c0] sm:$0xff]  ;;  %v581_v45 = vrot.slane %v2891_v44, %v2635_v10 }
 0x187   :  { %2226 = vmatprep.subr.bf16.mxu1 %v2225_v54  ;;  %v1283_v54 = vld [vmem:[%s2968_s5 + $0x138] sm:$0xff]  ;;  %v1308_v10 = vld [vmem:[%s2968_s5 + $0x200] sm:$0xff] }
 0x188   :  { %2202 = vmatpush3.bf16.msra.mxu0 %v2201_v36  ;;  %v2267_v55 = vpack.c.bf16 %v1283_v54, %v1282_v53  ;;  %v1269_v36 = vld [vmem:[%s2968_s5 + $0xc8] sm:$0xff] }
 0x189   :  { %2203 = vmatprep.subr.bf16.mxu0 %v2506_v49  ;;  %v2237_v46 = vpack.c.bf16 %v1269_v36, %v1268_v56 }
 0x18a   :  { %2228 = vmatpush3.bf16.msra.mxu1 %v2227_v28  ;;  %v1253_v28 = vld [vmem:[%s2968_s5 + $0x48] sm:$0xff] }
 0x18b   :  { %2230 = vmatprep.subr.bf16.mxu1 %v2229_v61  ;;  %v2269_v61 = vpack.c.bf16 %v1301_v58, %v1300_v57  ;;  %v2239_v62 = vpack.c.bf16 %v1253_v28, %v1252_v59  ;;  %v1310_v59 = vld [vmem:[%s2968_s5 + $0x210] sm:$0xff]  ;;  %v1311_v28 = vld [vmem:[%s2968_s5 + $0x218] sm:$0xff] }
 0x18c   :  { %2205 = vmatpush3.bf16.msra.mxu0 %v2204_v0  ;;  %v1285_v0 = vld [vmem:[%s2968_s5 + $0x148] sm:$0xff] }
 0x18d   :  { %2206 = vmatprep.subr.bf16.mxu0 %v2506_v49  ;;  %v2271_v1 = vpack.c.bf16 %v1285_v0, %v1284_v63  ;;  %v2289_v63 = vpack.c.bf16 %v1311_v28, %v1310_v59  ;;  %v1312_v0 = vld [vmem:[%s2968_s5 + $0x220] sm:$0xff] }
 0x18e   :  { %2232 = vmatpush3.bf16.msra.mxu1 %v2231_v4  ;;  %v2241_v4 = vpack.c.bf16 %v1271_v3, %v1270_v2  ;;  %v1314_v3 = vld [vmem:[%s2968_s5 + $0x230] sm:$0xff] }
 0x18f   :  { %2234 = vmatprep.subr.bf16.mxu1 %v2233_v5  ;;  %v1303_v5 = vld [vmem:[%s2968_s5 + $0x1d8] sm:$0xff] }
 0x190   :  { %2208 = vmatpush3.bf16.msra.mxu0 %v2207_v9  ;;  %v2273_v9 = vpack.c.bf16 %v1303_v5, %v1302_v35  ;;  %v1315_v35 = vld [vmem:[%s2968_s5 + $0x238] sm:$0xff]  ;;  %v1317_v5 = vld [vmem:[%s2968_s5 + $0x248] sm:$0xff] }
 0x191   :  { %2209 = vmatprep.subr.bf16.mxu0 %v2506_v49 }
 0x192   :  { %2236 = vmatpush3.bf16.msra.mxu1 %v2235_v17  ;;  %v1287_v17 = vld [vmem:[%s2968_s5 + $0x158] sm:$0xff] }
 0x193   :  { %2238 = vmatprep.subr.bf16.mxu1 %v2237_v46 }
 0x194   :  { %2211 = vmatpush3.bf16.msra.mxu0 %v2210_v18  ;;  %v2275_v18 = vpack.c.bf16 %v1287_v17, %v1286_v16  ;;  %v597_v16 = vrot.slane %v2891_v44, %v2643_v15 }
 0x195   :  { %2212 = vmatprep.subr.bf16.mxu0 %v2506_v49 }
 0x196   :  { %2240 = vmatpush3.bf16.msra.mxu1 %v2239_v62 }
 0x197   :  { %2242 = vmatprep.subr.bf16.mxu1 %v2241_v4  ;;  %v2295_v4 = vpack.c.bf16 %v1315_v35, %v1314_v3 }
 0x198   :  { %2214 = vmatpush3.bf16.msra.mxu0 %v2213_v21  ;;  %v1304_v21 = vld [vmem:[%s2968_s5 + $0x1e0] sm:$0xff] }
 0x199   :  { %2215 = vmatprep.subr.bf16.mxu0 %v2506_v49  ;;  %v2277_v26 = vpack.c.bf16 %v1305_v23, %v1304_v21  ;;  %v1320_v23 = vld [vmem:[%s2968_s5 + $0x260] sm:$0xff] }
 0x19a   :  { %2244 = vmatpush3.bf16.msra.mxu1 %v2243_v14 }
 0x19b   :  { %2246 = vmatprep.subr.bf16.mxu1 %v2245_v22 }
 0x19c   :  { %2217 = vmatpush3.bf16.msra.mxu0 %v2216_v24  ;;  %v1256_v24 = vld [vmem:[%s2968_s5 + $0x60] sm:$0xff] }
 0x19d   :  { %2218 = vmatprep.subr.bf16.mxu0 %v2506_v49  ;;  %v2247_v27 = vpack.c.bf16 %v1257_v25, %v1256_v24  ;;  %v1321_v24 = vld [vmem:[%s2968_s5 + $0x268] sm:$0xff] }
 0x19e   :  { %v2304_v15 = vpack.c.bf16 %v1321_v24, %v1320_v23 }
 0x19f   :  { %2248 = vmatpush3.bf16.msra.mxu1 %v2247_v27  ;;  %v1322_v27 = vld [vmem:[%s2968_s5 + $0x270] sm:$0xff] }
 0x1a0   :  { %2220 = vmatpush3.bf16.msra.mxu0 %v2219_v30  ;;  %v1289_v30 = vld [vmem:[%s2968_s5 + $0x168] sm:$0xff] }
 0x1a1   :  { %2254 = vmatprep.subr.bf16.mxu0 %v2253_v31  ;;  %v1274_v31 = vld [vmem:[%s2968_s5 + $0xf0] sm:$0xff]  ;;  %v2279_v32 = vpack.c.bf16 %v1289_v30, %v1288_v29  ;;  %v1323_v29 = vld [vmem:[%s2968_s5 + $0x278] sm:$0xff] }
 0x1a2   :  { %v2307_v30 = vpack.c.bf16 %v1323_v29, %v1322_v27 }
 0x1a3   :  { %1776 = vmatmul.mubr.f32.vlgmr.msra.gmra.mrb[4].mxu0 %v2679_v8  ;;  %v1299_v8 = vld [vmem:[%s2968_s5 + $0x1b8] sm:$0xff] }
 0x1a4   :  { %2256 = vmatpush3.bf16.msra.mxu0 %v2255_v37  ;;  %v2265_v52 = vpack.c.bf16 %v1299_v8, %v1298_v48  ;;  %v2249_v37 = vpack.c.bf16 %v1275_v33, %v1274_v31  ;;  %v585_v48 = vrot.slane %v2891_v44, %v2637_v11  ;;  %v593_v8 = vrot.slane %v2891_v44, %v2641_v13  ;;  %v1309_v11 = vld [vmem:[%s2968_s5 + $0x208] sm:$0xff] }
 0x1a5   :  { %2258 = vmatprep.subr.bf16.mxu0 %v2257_v60  ;;  %v2281_v60 = vpack.c.bf16 %v1307_v51, %v1306_v34  ;;  %v2286_v13 = vpack.c.bf16 %v1309_v11, %v1308_v10 }
 0x1a6   :  { %2250 = vmatprep.subr.bf16.mxu1 %v2249_v37 }
 0x1a7   :  { %2252 = vmatpush3.bf16.msra.mxu1 %v2251_v41 }
 0x1a8   :  { %2260 = vmatpush3.bf16.msra.mxu0 %v2259_v42  ;;  %v1291_v42 = vld [vmem:[%s2968_s5 + $0x178] sm:$0xff]  ;;  %2285 = vmatprep.subr.bf16.mxu1 %v2506_v49 }
 0x1a9   :  { %2262 = vmatprep.subr.bf16.mxu0 %v2261_v43  ;;  %v2283_v43 = vpack.c.bf16 %v1291_v42, %v1290_v40 }
 0x1ac   :  { %2264 = vmatpush3.bf16.msra.mxu0 %v2263_v50  ;;  %v589_v50 = vrot.slane %v2891_v44, %v2639_v12 }
 0x1ad   :  { %2266 = vmatprep.subr.bf16.mxu0 %v2265_v52 }
 0x1b0   :  { %2268 = vmatpush3.bf16.msra.mxu0 %v2267_v55 }
 0x1b1   :  { %2270 = vmatprep.subr.bf16.mxu0 %v2269_v61 }
 0x1b4   :  { %2272 = vmatpush3.bf16.msra.mxu0 %v2271_v1  ;;  %v1313_v1 = vld [vmem:[%s2968_s5 + $0x228] sm:$0xff] }
 0x1b5   :  { %2274 = vmatprep.subr.bf16.mxu0 %v2273_v9  ;;  %v2292_v2 = vpack.c.bf16 %v1313_v1, %v1312_v0  ;;  %v1319_v9 = vld [vmem:[%s2968_s5 + $0x258] sm:$0xff] }
 0x1b6   :  { %v2301_v21 = vpack.c.bf16 %v1319_v9, %v1318_v7 }
 0x1b8   :  { %2276 = vmatpush3.bf16.msra.mxu0 %v2275_v18 }
 0x1b9   :  { %2278 = vmatprep.subr.bf16.mxu0 %v2277_v26 }
 0x1bc   :  { %2280 = vmatpush3.bf16.msra.mxu0 %v2279_v32 }
 0x1bd   :  { %2282 = vmatprep.subr.bf16.mxu0 %v2281_v60  ;;  %v1567_v60 = vld [vmem:[#allocation9] ss:$0 sm:$0xff] }
 0x1c0   :  { %2284 = vmatpush3.bf16.msra.mxu0 %v2283_v43 }
 0x236   :  { %v811_v52 = vpop.f32.mrb[0].mxu0  ;;  %v1024_v53 = vpop.f32.mrb[0].mxu1 }
 0x237   :  { %v2309_v54 = vadd.f32 %v811_v52, %v581_v45  ;;  %v813_v55 = vpop.f32.mrb[1].mxu0  ;;  %v1026_v56 = vpop.f32.mrb[1].mxu1  ;;  %v2311_v46 = vadd.f32 %v1024_v53, %v589_v50  ;;  %v1568_v52 = vld [vmem:[#allocation10] ss:$0 sm:$0xff] }
 0x238   :  { %v2310_v36 = vadd.f32 %v813_v55, %v585_v48  ;;  %v2312_v57 = vadd.f32 %v1026_v56, %v593_v8 }
 0x239   :  { %2344 = vtanh.f32 %v2309_v54 }
 0x23a   :  { %2346 = vtanh.f32 %v2310_v36 }
 0x23b   :  { %2348 = vtanh.f32 %v2312_v57 }
 0x23c   :  { %2350 = vtanh.f32 %v2311_v46 }
 0x243   :  { %v2345_v12 = vpop.eup %2344 }
 0x244   :  { %v2347_v58 = vpop.eup %2346 }
 0x245   :  { %v2349_v61 = vpop.eup %2348  ;;  %1395 = vmatprep.mubr.f32.mxu1 %v2347_v58 }
 0x246   :  { %v2351_v62 = vpop.eup %2350  ;;  %1465 = vmatprep.mubr.f32.mxu0 %v2349_v61  ;;  %1396 = vmatmul.mubr.f32.vlgmr.msra.gmra.mrb[4].mxu1 %v2345_v12 }
 0x247   :  { %1466 = vmatmul.mubr.f32.vlgmr.msra.gmra.mrb[6].mxu0 %v2351_v62  ;;  %2287 = vmatpush3.bf16.msra.mxu1 %v2286_v13 }
 0x248   :  { %2288 = vmatprep.subr.bf16.mxu1 %v2506_v49  ;;  %1810 = vmatprep.mubr.msk.f32.mxu1 %vm2507_vm0, %v2505_v47  ;;  %v1316_v47 = vld [vmem:[%s2968_s5 + $0x240] sm:$0xff] }
 0x249   :  { %v2298_v6 = vpack.c.bf16 %v1317_v5, %v1316_v47 }
 0x24b   :  { %2290 = vmatpush3.bf16.msra.mxu1 %v2289_v63 }
 0x24c   :  { %2291 = vmatprep.subr.bf16.mxu1 %v2506_v49 }
 0x24f   :  { %2293 = vmatpush3.bf16.msra.mxu1 %v2292_v2 }
 0x250   :  { %2294 = vmatprep.subr.bf16.mxu1 %v2506_v49 }
 0x253   :  { %2296 = vmatpush3.bf16.msra.mxu1 %v2295_v4 }
 0x254   :  { %2297 = vmatprep.subr.bf16.mxu1 %v2506_v49 }
 0x256   :  { %v1601_v14 = vpop.f32.mrb[2].mxu0 }
 0x257   :  { %v1636_v17 = vpop.f32.mrb[2].mxu1  ;;  %v1602_v18 = vpop.f32.mrb[3].mxu0  ;;  %2299 = vmatpush3.bf16.msra.mxu1 %v2298_v6 }
 0x258   :  { %v1603_v19 = vadd.f32 %v1602_v18, %v1601_v14  ;;  %v1637_v20 = vpop.f32.mrb[3].mxu1  ;;  %2300 = vmatprep.subr.bf16.mxu1 %v2506_v49 }
 0x259   :  { %v1638_v22 = vadd.f32 %v1637_v20, %v1636_v17 }
 0x25a   :  { %v1096_v25 = vadd.f32 %v1603_v19, %v597_v16 }
 0x25b   :  { %2302 = vmatpush3.bf16.msra.mxu1 %v2301_v21 }
 0x25c   :  { %v1166_v26 = vadd.f32 %v1638_v22, %v1096_v25  ;;  %2303 = vmatprep.subr.bf16.mxu1 %v2506_v49 }
 0x25f   :  { %2305 = vmatpush3.bf16.msra.mxu1 %v2304_v15 }
 0x260   :  { %2306 = vmatprep.subr.bf16.mxu1 %v2506_v49 }
 0x263   :  { %2308 = vmatpush3.bf16.msra.mxu1 %v2307_v30 }
 0x276   :  { %v1235_v31 = vpop.f32.mrb[4].mxu0 }
 0x277   :  { %v1236_v32 = vadd.f32 %v1235_v31, %v1166_v26  ;;  %v1777_v33 = vpop.f32.mrb[5].mxu0 }
 0x279   :  { %2352 = vtanh.f32 %v1236_v32 }
 0x283   :  { %v2353_v34 = vpop.eup %2352 }
 0x284   :  { %1811 = vmatmul.mubr.f32.vlgmr.msra.gmra.mrb[6].mxu1 %v2353_v34 }
 0x319   :  { %v1688_v51 = vpop.f32.mrb[4].mxu1 }
 0x31a   :  { %v1723_v37 = vpop.f32.mrb[6].mxu0  ;;  %v1689_v38 = vpop.f32.mrb[5].mxu1 }
 0x31b   :  { %v1690_v39 = vadd.f32 %v1689_v38, %v1688_v51  ;;  %v1724_v40 = vpop.f32.mrb[7].mxu0 }
 0x31c   :  { %v1725_v41 = vadd.f32 %v1724_v40, %v1723_v37 }
 0x31d   :  { %v1398_v42 = vadd.f32 %v1690_v39, %v1567_v60 }
 0x31f   :  { %v1468_v43 = vadd.f32 %v1725_v41, %v1398_v42 }
 0x357   :  { %v1537_v44 = vpop.f32.mrb[6].mxu1 }
 0x358   :  { %v1538_v45 = vadd.f32 %v1537_v44, %v1468_v43  ;;  %v1812_v48 = vpop.f32.mrb[7].mxu1 }
 0x35a   :  { %v1541_v49 = vmul.f32 0.5, %v1538_v45 }
 0x35c   :  { %2354 = vtanh.f32 %v1541_v49 }
 0x366   :  { %v2355_v8 = vpop.eup %2354 }
 0x367   :  { %v1543_v50 = vadd.f32 1.0, %v2355_v8 }
 0x369   :  { %v1544_v53 = vmul.f32 0.5, %v1543_v50 }
 0x36b   :  { %v1552_v54 = vmul.f32 %v1568_v52, %v1544_v53 }
 0x36d   :  { %v1554_v55 = vsel %vm1553_vm1, %v1552_v54, 0.0 }
 0x36e   :  { %1555 = vadd.xlane.f32.xlu0 %v1554_v55 }
 0x3fb   :  { %v1556_v56 = vpop.xlane.xlu0 %1555 }
 0x3fc   :  { %1558 = vst.msk [vmem:[%s2971_s8] sm:$0xff] %vm1557_vm2, %v1556_v56 }
 0x3fd   :  { %1563 = vsyncpa [#allocation3], 1 }
 0x3fe   :  { %1564 = vsyncpa [#allocation5], 1 }
 0x3ff   :  { %1565 = vsyncpa [#allocation8], 1 }
 0x400   :  { %1566 = vsyncpa [#allocation11], 1 }

</bundles_post_ra>
